<compile_context>
chip_gen: v7x
topology: tpu7x:2x2x1
jax: 0.10.0
libtpu: 0.0.40
codegen_flags: <defaults>
</compile_context>

<pallas_src>
import jax
import jax.numpy as jnp
from jax import lax
from jax.experimental import pallas as pl
from jax.experimental.pallas import tpu as pltpu


def _lstm_classifier_kernel(
    x_ref,     # (T, Bt, D)   time-major inputs for this batch tile
    wih_ref,   # (D, 4H)      input->gate weights (gate order i, f, o, g)
    whh_ref,   # (H, 4H)      recurrent weights   (gate order i, f, o, g)
    b_ref,     # (1, 4H)      fused bias b_ih + b_hh
    w1_ref,    # (H, 64)      fc1 weight (transposed)
    b1_ref,    # (1, 64)      fc1 bias
    out_ref,   # (Bt, H)      hn[-1]
    out1_ref,  # (Bt, 64)     fc1(relu(hn[-1]))
):
    T, Bt, D = x_ref.shape
    H = whh_ref.shape[0]
    Bh = Bt // 2  # two independent sub-batch chains, interleaved for ILP

    w_ih = wih_ref[...]       # (D, 4H): tiny, stays in vregs
    bias = b_ref[...]         # (1, 4H)

    # Fused input projection: one (Bt, D) @ (D, 4H) matmul per time step, computed
    # in-kernel (no gx round trip through HBM).  These do not depend on h/c, so the
    # unrolled schedule overlaps them with the serial recurrence below.
    # TODO(synk): for production T=300 tile time with an "arbitrary" grid axis,
    # carry h/c in VMEM scratch across time tiles (init via pl.when(t==0)), and
    # bound the in-tile unroll (e.g. 8) instead of fully unrolling 300 steps.
    gx = [
        jnp.dot(x_ref[t], w_ih, preferred_element_type=jnp.float32) + bias
        for t in range(T)
    ]

    def gate_update(gates, c):
        # Gate order (i, f, o, g): one sigmoid covers the first 3H lanes, one tanh
        # covers the last H -> 2 EUP pushes per chain per step instead of 4.
        sig = jax.nn.sigmoid(gates[:, : 3 * H])
        g_g = jnp.tanh(gates[:, 3 * H :])
        i_g = sig[:, :H]
        f_g = sig[:, H : 2 * H]
        o_g = sig[:, 2 * H : 3 * H]
        c_new = f_g * c + i_g * g_g
        h_new = o_g * jnp.tanh(c_new)
        return h_new, c_new

    zeros = jnp.zeros((Bh, H), jnp.float32)
    h_a, c_a = zeros, zeros
    h_b, c_b = zeros, zeros

    # Static Python loop == full unroll (T is small and static at these shapes).
    for t in range(T):
        # Re-read the recurrent weights from VMEM each step rather than hoisting the
        # full tile into vregs (at production H=128 the hoist fills the vreg file).
        w_hh = whh_ref[...]
        gates_a = gx[t][:Bh] + jnp.dot(h_a, w_hh, preferred_element_type=jnp.float32)
        gates_b = gx[t][Bh:] + jnp.dot(h_b, w_hh, preferred_element_type=jnp.float32)
        # Two independent chains: chain B's MXU work overlaps chain A's EUP work.
        h_a, c_a = gate_update(gates_a, c_a)
        h_b, c_b = gate_update(gates_b, c_b)

    h_fin = jnp.concatenate([h_a, h_b], axis=0)  # (Bt, H)
    out_ref[...] = h_fin

    relu_h = jnp.maximum(h_fin, 0.0)
    # TODO(synk): out (Bt, 32) / out1 (Bt, 64) are sub-128-lane stores; pad/concat
    # into a lane-dense slab if the batch tile ever becomes large.
    out1_ref[...] = (
        jnp.dot(relu_h, w1_ref[...], preferred_element_type=jnp.float32) + b1_ref[...]
    )


def prepare_params(params):
    """One-time parameter prep (kept OUTSIDE the jitted per-call forward).

    Re-packs PyTorch gate order (i, f, g, o) -> (i, f, o, g) with static slices +
    concatenate (no runtime gather), fuses the two biases, and pre-transposes the
    weights into the layouts the kernel consumes.
    """
    H = params["w_hh"].shape[1]

    def repack(w):  # rows grouped per gate along axis 0: reorder to (i, f, o, g)
        return jnp.concatenate(
            [w[0:H], w[H : 2 * H], w[3 * H : 4 * H], w[2 * H : 3 * H]], axis=0
        )

    b = repack(params["b_ih"] + params["b_hh"])
    return {
        "w_ih_t": repack(params["w_ih"]).T,    # (D, 4H)
        "w_hh_t": repack(params["w_hh"]).T,    # (H, 4H)
        "b": b.reshape(1, 4 * H),              # (1, 4H)
        "w1_t": params["w1"].T,                # (H, 64)
        "b1": params["b1"].reshape(1, -1),     # (1, 64)
    }


@jax.jit
def lstm_classifier_forward(x, prep):
    """x: (B, T, D) float32 (batch_first). Returns (out, out1) = (hn[-1], fc1(relu(hn[-1])))."""
    B, T, D = x.shape
    H = prep["w_hh_t"].shape[0]
    F1 = prep["w1_t"].shape[1]

    # Pad the batch to a multiple of 16 so each of the two interleaved sub-batch
    # chains is an 8-row (sublane-aligned) group.
    Bp = ((B + 15) // 16) * 16
    x_p = jnp.pad(x, ((0, Bp - B), (0, 0), (0, 0)))
    x_tm = jnp.transpose(x_p, (1, 0, 2))  # (T, Bp, D) time-major

    # Batch tile = whole padded batch at these sizes (grid=(1,), still "parallel").
    # TODO(synk): for production batches pick Bt=128 (v5e) / 256 (v6e/v7x) so the
    # MXU M-dim stays full and v7x's two TensorCores each take half of the
    # "parallel" batch grid; size double-buffered tiles for v7x's 64 MiB VMEM and
    # set vmem_limit_bytes explicitly (cast gx/w_hh to bf16 on v6e/v7x if needed).
    Bt = Bp
    grid = (Bp // Bt,)

    out_p, out1_p = pl.pallas_call(
        _lstm_classifier_kernel,
        out_shape=(
            jax.ShapeDtypeStruct((Bp, H), jnp.float32),
            jax.ShapeDtypeStruct((Bp, F1), jnp.float32),
        ),
        grid=grid,
        in_specs=[
            pl.BlockSpec((T, Bt, D), lambda b: (0, b, 0)),
            pl.BlockSpec((D, 4 * H), lambda b: (0, 0)),
            pl.BlockSpec((H, 4 * H), lambda b: (0, 0)),
            pl.BlockSpec((1, 4 * H), lambda b: (0, 0)),
            pl.BlockSpec((H, F1), lambda b: (0, 0)),
            pl.BlockSpec((1, F1), lambda b: (0, 0)),
        ],
        out_specs=(
            pl.BlockSpec((Bt, H), lambda b: (b, 0)),
            pl.BlockSpec((Bt, F1), lambda b: (b, 0)),
        ),
        compiler_params=pltpu.CompilerParams(dimension_semantics=("parallel",)),
    )(x_tm, prep["w_ih_t"], prep["w_hh_t"], prep["b"], prep["w1_t"], prep["b1"])

    return out_p[:B], out1_p[:B]


def _reference_forward(x, params):
    """Pure-JAX reference implementing the same PyTorch LSTM semantics."""
    B, T, D = x.shape
    H = params["w_hh"].shape[1]
    w_ih_t = params["w_ih"].T            # (D, 4H)
    w_hh_t = params["w_hh"].T            # (H, 4H)
    b = params["b_ih"] + params["b_hh"]  # (4H,)

    def step(carry, x_t):
        h, c = carry
        gates = x_t @ w_ih_t + h @ w_hh_t + b
        i = jax.nn.sigmoid(gates[:, 0 * H:1 * H])
        f = jax.nn.sigmoid(gates[:, 1 * H:2 * H])
        g = jnp.tanh(gates[:, 2 * H:3 * H])
        o = jax.nn.sigmoid(gates[:, 3 * H:4 * H])
        c_new = f * c + i * g
        h_new = o * jnp.tanh(c_new)
        return (h_new, c_new), None

    h0 = jnp.zeros((B, H), jnp.float32)
    c0 = jnp.zeros((B, H), jnp.float32)
    (h_fin, _), _ = lax.scan(step, (h0, c0), jnp.transpose(x, (1, 0, 2)))
    out = h_fin
    out1 = jnp.maximum(out, 0.0) @ params["w1"].T + params["b1"]
    return out, out1


def _init_params(key, input_size, hidden_size, num_classes):
    """Deterministic init mimicking PyTorch's U(-1/sqrt(H), 1/sqrt(H)) scheme."""
    ks = jax.random.split(key, 8)
    s = 1.0 / jnp.sqrt(hidden_size)
    s1 = 1.0 / jnp.sqrt(hidden_size)
    s2 = 1.0 / jnp.sqrt(64.0)
    u = lambda k, shape, scale: jax.random.uniform(
        k, shape, jnp.float32, -scale, scale
    )
    return {
        "w_ih": u(ks[0], (4 * hidden_size, input_size), s),
        "w_hh": u(ks[1], (4 * hidden_size, hidden_size), s),
        "b_ih": u(ks[2], (4 * hidden_size,), s),
        "b_hh": u(ks[3], (4 * hidden_size,), s),
        "w1": u(ks[4], (64, hidden_size), s1),
        "b1": u(ks[5], (64,), s1),
        # fc2 params kept for module parity; its output is dead code in forward().
        "w2": u(ks[6], (num_classes, 64), s2),
        "b2": u(ks[7], (num_classes,), s2),
    }


if __name__ == "__main__":
    # Small shapes consistent with the module: batch=2, seq(window)=8,
    # input_size=4, hidden=32, num_classes=3.
    B, T, D, H, C = 2, 8, 4, 32, 3

    key = jax.random.PRNGKey(0)
    k_x, k_p = jax.random.split(key)
    x = jax.random.normal(k_x, (B, T, D), dtype=jnp.float32)
    params = _init_params(k_p, D, H, C)
    prep = prepare_params(params)   # one-time weight repack/transpose

    out, out1 = lstm_classifier_forward(x, prep)
    out, out1 = jax.block_until_ready((out, out1))

    ref_out, ref_out1 = _reference_forward(x, params)
    assert out.shape == (B, H) and out1.shape == (B, 64)
    assert jnp.allclose(out, ref_out, atol=1e-5, rtol=1e-5)
    assert jnp.allclose(out1, ref_out1, atol=1e-5, rtol=1e-5)

    print("KERNEL_OK")
</pallas_src>

<mosaic_0001>
module attributes {stable_mosaic.version = 11 : i64} {
  func.func @_lstm_classifier_kernel(%arg0: i32, %arg1: memref<8x16x4xf32, #tpu.memory_space<vmem>>, %arg2: memref<4x128xf32, #tpu.memory_space<vmem>>, %arg3: memref<32x128xf32, #tpu.memory_space<vmem>>, %arg4: memref<1x128xf32, #tpu.memory_space<vmem>>, %arg5: memref<32x64xf32, #tpu.memory_space<vmem>>, %arg6: memref<1x64xf32, #tpu.memory_space<vmem>>, %arg7: memref<16x32xf32, #tpu.memory_space<vmem>>, %arg8: memref<16x64xf32, #tpu.memory_space<vmem>>) attributes {dimension_semantics = [#tpu.dimension_semantics<parallel>], iteration_bounds = array<i64: 1>, scalar_prefetch = 0 : i64, scratch_operands = 0 : i64, tpu.core_type = #tpu.core_type<tc>, window_params = [{transform_indices = @transform_0, window_bounds = array<i64: 8, 16, 4>}, {pipeline_mode = #tpu.pipeline_mode<synchronous>, transform_indices = @transform_1, window_bounds = array<i64: 4, 128>}, {pipeline_mode = #tpu.pipeline_mode<synchronous>, transform_indices = @transform_2, window_bounds = array<i64: 32, 128>}, {pipeline_mode = #tpu.pipeline_mode<synchronous>, transform_indices = @transform_3, window_bounds = array<i64: 1, 128>}, {pipeline_mode = #tpu.pipeline_mode<synchronous>, transform_indices = @transform_4, window_bounds = array<i64: 32, 64>}, {pipeline_mode = #tpu.pipeline_mode<synchronous>, transform_indices = @transform_5, window_bounds = array<i64: 1, 64>}, {transform_indices = @transform_6, window_bounds = array<i64: 16, 32>}, {transform_indices = @transform_7, window_bounds = array<i64: 16, 64>}]} {
    %c0 = arith.constant 0 : index
    %c0_0 = arith.constant 0 : index
    %0 = vector.load %arg2[%c0, %c0_0] : memref<4x128xf32, #tpu.memory_space<vmem>>, vector<4x128xf32>
    %c0_1 = arith.constant 0 : index
    %c0_2 = arith.constant 0 : index
    %1 = vector.load %arg4[%c0_1, %c0_2] : memref<1x128xf32, #tpu.memory_space<vmem>>, vector<1x128xf32>
    %c0_3 = arith.constant 0 : index
    %c0_4 = arith.constant 0 : index
    %c0_5 = arith.constant 0 : index
    %2 = vector.load %arg1[%c0_3, %c0_4, %c0_5] : memref<8x16x4xf32, #tpu.memory_space<vmem>>, vector<1x16x4xf32>
    %3 = vector.shape_cast %2 : vector<1x16x4xf32> to vector<16x4xf32>
    %cst = arith.constant dense<0.000000e+00> : vector<16x128xf32>
    %4 = tpu.matmul %3, %0, %cst {dimension_numbers = #tpu.dot_dimension_numbers<[1], [0], [0], [1], [0, 0, 1, 1], [], []>} : vector<16x4xf32>, vector<4x128xf32>, vector<16x128xf32> -> vector<16x128xf32>
    %5 = vector.broadcast %1 : vector<1x128xf32> to vector<16x128xf32>
    %6 = arith.addf %4, %5 : vector<16x128xf32>
    %c1 = arith.constant 1 : index
    %c0_6 = arith.constant 0 : index
    %c0_7 = arith.constant 0 : index
    %7 = vector.load %arg1[%c1, %c0_6, %c0_7] : memref<8x16x4xf32, #tpu.memory_space<vmem>>, vector<1x16x4xf32>
    %8 = vector.shape_cast %7 : vector<1x16x4xf32> to vector<16x4xf32>
    %cst_8 = arith.constant dense<0.000000e+00> : vector<16x128xf32>
    %9 = tpu.matmul %8, %0, %cst_8 {dimension_numbers = #tpu.dot_dimension_numbers<[1], [0], [0], [1], [0, 0, 1, 1], [], []>} : vector<16x4xf32>, vector<4x128xf32>, vector<16x128xf32> -> vector<16x128xf32>
    %10 = vector.broadcast %1 : vector<1x128xf32> to vector<16x128xf32>
    %11 = arith.addf %9, %10 : vector<16x128xf32>
    %c2 = arith.constant 2 : index
    %c0_9 = arith.constant 0 : index
    %c0_10 = arith.constant 0 : index
    %12 = vector.load %arg1[%c2, %c0_9, %c0_10] : memref<8x16x4xf32, #tpu.memory_space<vmem>>, vector<1x16x4xf32>
    %13 = vector.shape_cast %12 : vector<1x16x4xf32> to vector<16x4xf32>
    %cst_11 = arith.constant dense<0.000000e+00> : vector<16x128xf32>
    %14 = tpu.matmul %13, %0, %cst_11 {dimension_numbers = #tpu.dot_dimension_numbers<[1], [0], [0], [1], [0, 0, 1, 1], [], []>} : vector<16x4xf32>, vector<4x128xf32>, vector<16x128xf32> -> vector<16x128xf32>
    %15 = vector.broadcast %1 : vector<1x128xf32> to vector<16x128xf32>
    %16 = arith.addf %14, %15 : vector<16x128xf32>
    %c3 = arith.constant 3 : index
    %c0_12 = arith.constant 0 : index
    %c0_13 = arith.constant 0 : index
    %17 = vector.load %arg1[%c3, %c0_12, %c0_13] : memref<8x16x4xf32, #tpu.memory_space<vmem>>, vector<1x16x4xf32>
    %18 = vector.shape_cast %17 : vector<1x16x4xf32> to vector<16x4xf32>
    %cst_14 = arith.constant dense<0.000000e+00> : vector<16x128xf32>
    %19 = tpu.matmul %18, %0, %cst_14 {dimension_numbers = #tpu.dot_dimension_numbers<[1], [0], [0], [1], [0, 0, 1, 1], [], []>} : vector<16x4xf32>, vector<4x128xf32>, vector<16x128xf32> -> vector<16x128xf32>
    %20 = vector.broadcast %1 : vector<1x128xf32> to vector<16x128xf32>
    %21 = arith.addf %19, %20 : vector<16x128xf32>
    %c4 = arith.constant 4 : index
    %c0_15 = arith.constant 0 : index
    %c0_16 = arith.constant 0 : index
    %22 = vector.load %arg1[%c4, %c0_15, %c0_16] : memref<8x16x4xf32, #tpu.memory_space<vmem>>, vector<1x16x4xf32>
    %23 = vector.shape_cast %22 : vector<1x16x4xf32> to vector<16x4xf32>
    %cst_17 = arith.constant dense<0.000000e+00> : vector<16x128xf32>
    %24 = tpu.matmul %23, %0, %cst_17 {dimension_numbers = #tpu.dot_dimension_numbers<[1], [0], [0], [1], [0, 0, 1, 1], [], []>} : vector<16x4xf32>, vector<4x128xf32>, vector<16x128xf32> -> vector<16x128xf32>
    %25 = vector.broadcast %1 : vector<1x128xf32> to vector<16x128xf32>
    %26 = arith.addf %24, %25 : vector<16x128xf32>
    %c5 = arith.constant 5 : index
    %c0_18 = arith.constant 0 : index
    %c0_19 = arith.constant 0 : index
    %27 = vector.load %arg1[%c5, %c0_18, %c0_19] : memref<8x16x4xf32, #tpu.memory_space<vmem>>, vector<1x16x4xf32>
    %28 = vector.shape_cast %27 : vector<1x16x4xf32> to vector<16x4xf32>
    %cst_20 = arith.constant dense<0.000000e+00> : vector<16x128xf32>
    %29 = tpu.matmul %28, %0, %cst_20 {dimension_numbers = #tpu.dot_dimension_numbers<[1], [0], [0], [1], [0, 0, 1, 1], [], []>} : vector<16x4xf32>, vector<4x128xf32>, vector<16x128xf32> -> vector<16x128xf32>
    %30 = vector.broadcast %1 : vector<1x128xf32> to vector<16x128xf32>
    %31 = arith.addf %29, %30 : vector<16x128xf32>
    %c6 = arith.constant 6 : index
    %c0_21 = arith.constant 0 : index
    %c0_22 = arith.constant 0 : index
    %32 = vector.load %arg1[%c6, %c0_21, %c0_22] : memref<8x16x4xf32, #tpu.memory_space<vmem>>, vector<1x16x4xf32>
    %33 = vector.shape_cast %32 : vector<1x16x4xf32> to vector<16x4xf32>
    %cst_23 = arith.constant dense<0.000000e+00> : vector<16x128xf32>
    %34 = tpu.matmul %33, %0, %cst_23 {dimension_numbers = #tpu.dot_dimension_numbers<[1], [0], [0], [1], [0, 0, 1, 1], [], []>} : vector<16x4xf32>, vector<4x128xf32>, vector<16x128xf32> -> vector<16x128xf32>
    %35 = vector.broadcast %1 : vector<1x128xf32> to vector<16x128xf32>
    %36 = arith.addf %34, %35 : vector<16x128xf32>
    %c7 = arith.constant 7 : index
    %c0_24 = arith.constant 0 : index
    %c0_25 = arith.constant 0 : index
    %37 = vector.load %arg1[%c7, %c0_24, %c0_25] : memref<8x16x4xf32, #tpu.memory_space<vmem>>, vector<1x16x4xf32>
    %38 = vector.shape_cast %37 : vector<1x16x4xf32> to vector<16x4xf32>
    %cst_26 = arith.constant dense<0.000000e+00> : vector<16x128xf32>
    %39 = tpu.matmul %38, %0, %cst_26 {dimension_numbers = #tpu.dot_dimension_numbers<[1], [0], [0], [1], [0, 0, 1, 1], [], []>} : vector<16x4xf32>, vector<4x128xf32>, vector<16x128xf32> -> vector<16x128xf32>
    %40 = vector.broadcast %1 : vector<1x128xf32> to vector<16x128xf32>
    %41 = arith.addf %39, %40 : vector<16x128xf32>
    %cst_27 = arith.constant 0.000000e+00 : f32
    %42 = vector.broadcast %cst_27 : f32 to vector<8x32xf32>
    %c0_28 = arith.constant 0 : index
    %c0_29 = arith.constant 0 : index
    %43 = vector.load %arg3[%c0_28, %c0_29] : memref<32x128xf32, #tpu.memory_space<vmem>>, vector<32x128xf32>
    %44 = vector.extract_strided_slice %6 {offsets = [0, 0], sizes = [8, 128], strides = [1, 1]} : vector<16x128xf32> to vector<8x128xf32>
    %cst_30 = arith.constant dense<0.000000e+00> : vector<8x128xf32>
    %45 = tpu.matmul %42, %43, %cst_30 {dimension_numbers = #tpu.dot_dimension_numbers<[1], [0], [0], [1], [0, 0, 1, 1], [], []>} : vector<8x32xf32>, vector<32x128xf32>, vector<8x128xf32> -> vector<8x128xf32>
    %46 = arith.addf %44, %45 : vector<8x128xf32>
    %47 = vector.extract_strided_slice %6 {offsets = [8, 0], sizes = [8, 128], strides = [1, 1]} : vector<16x128xf32> to vector<8x128xf32>
    %cst_31 = arith.constant dense<0.000000e+00> : vector<8x128xf32>
    %48 = tpu.matmul %42, %43, %cst_31 {dimension_numbers = #tpu.dot_dimension_numbers<[1], [0], [0], [1], [0, 0, 1, 1], [], []>} : vector<8x32xf32>, vector<32x128xf32>, vector<8x128xf32> -> vector<8x128xf32>
    %49 = arith.addf %47, %48 : vector<8x128xf32>
    %50 = vector.extract_strided_slice %46 {offsets = [0, 0], sizes = [8, 96], strides = [1, 1]} : vector<8x128xf32> to vector<8x96xf32>
    %51 = arith.negf %50 : vector<8x96xf32>
    %52 = math.exp %51 : vector<8x96xf32>
    %cst_32 = arith.constant 1.000000e+00 : f32
    %53 = vector.broadcast %cst_32 : f32 to vector<8x96xf32>
    %54 = arith.addf %53, %52 : vector<8x96xf32>
    %55 = arith.divf %53, %54 : vector<8x96xf32>
    %56 = vector.extract_strided_slice %46 {offsets = [0, 96], sizes = [8, 32], strides = [1, 1]} : vector<8x128xf32> to vector<8x32xf32>
    %57 = math.tanh %56 : vector<8x32xf32>
    %58 = vector.extract_strided_slice %55 {offsets = [0, 0], sizes = [8, 32], strides = [1, 1]} : vector<8x96xf32> to vector<8x32xf32>
    %59 = vector.extract_strided_slice %55 {offsets = [0, 32], sizes = [8, 32], strides = [1, 1]} : vector<8x96xf32> to vector<8x32xf32>
    %60 = vector.extract_strided_slice %55 {offsets = [0, 64], sizes = [8, 32], strides = [1, 1]} : vector<8x96xf32> to vector<8x32xf32>
    %61 = arith.mulf %59, %42 : vector<8x32xf32>
    %62 = arith.mulf %58, %57 : vector<8x32xf32>
    %63 = arith.addf %61, %62 : vector<8x32xf32>
    %64 = math.tanh %63 : vector<8x32xf32>
    %65 = arith.mulf %60, %64 : vector<8x32xf32>
    %66 = vector.extract_strided_slice %49 {offsets = [0, 0], sizes = [8, 96], strides = [1, 1]} : vector<8x128xf32> to vector<8x96xf32>
    %67 = arith.negf %66 : vector<8x96xf32>
    %68 = math.exp %67 : vector<8x96xf32>
    %cst_33 = arith.constant 1.000000e+00 : f32
    %69 = vector.broadcast %cst_33 : f32 to vector<8x96xf32>
    %70 = arith.addf %69, %68 : vector<8x96xf32>
    %71 = arith.divf %69, %70 : vector<8x96xf32>
    %72 = vector.extract_strided_slice %49 {offsets = [0, 96], sizes = [8, 32], strides = [1, 1]} : vector<8x128xf32> to vector<8x32xf32>
    %73 = math.tanh %72 : vector<8x32xf32>
    %74 = vector.extract_strided_slice %71 {offsets = [0, 0], sizes = [8, 32], strides = [1, 1]} : vector<8x96xf32> to vector<8x32xf32>
    %75 = vector.extract_strided_slice %71 {offsets = [0, 32], sizes = [8, 32], strides = [1, 1]} : vector<8x96xf32> to vector<8x32xf32>
    %76 = vector.extract_strided_slice %71 {offsets = [0, 64], sizes = [8, 32], strides = [1, 1]} : vector<8x96xf32> to vector<8x32xf32>
    %77 = arith.mulf %75, %42 : vector<8x32xf32>
    %78 = arith.mulf %74, %73 : vector<8x32xf32>
    %79 = arith.addf %77, %78 : vector<8x32xf32>
    %80 = math.tanh %79 : vector<8x32xf32>
    %81 = arith.mulf %76, %80 : vector<8x32xf32>
    %c0_34 = arith.constant 0 : index
    %c0_35 = arith.constant 0 : index
    %82 = vector.load %arg3[%c0_34, %c0_35] : memref<32x128xf32, #tpu.memory_space<vmem>>, vector<32x128xf32>
    %83 = vector.extract_strided_slice %11 {offsets = [0, 0], sizes = [8, 128], strides = [1, 1]} : vector<16x128xf32> to vector<8x128xf32>
    %cst_36 = arith.constant dense<0.000000e+00> : vector<8x128xf32>
    %84 = tpu.matmul %65, %82, %cst_36 {dimension_numbers = #tpu.dot_dimension_numbers<[1], [0], [0], [1], [0, 0, 1, 1], [], []>} : vector<8x32xf32>, vector<32x128xf32>, vector<8x128xf32> -> vector<8x128xf32>
    %85 = arith.addf %83, %84 : vector<8x128xf32>
    %86 = vector.extract_strided_slice %11 {offsets = [8, 0], sizes = [8, 128], strides = [1, 1]} : vector<16x128xf32> to vector<8x128xf32>
    %cst_37 = arith.constant dense<0.000000e+00> : vector<8x128xf32>
    %87 = tpu.matmul %81, %82, %cst_37 {dimension_numbers = #tpu.dot_dimension_numbers<[1], [0], [0], [1], [0, 0, 1, 1], [], []>} : vector<8x32xf32>, vector<32x128xf32>, vector<8x128xf32> -> vector<8x128xf32>
    %88 = arith.addf %86, %87 : vector<8x128xf32>
    %89 = vector.extract_strided_slice %85 {offsets = [0, 0], sizes = [8, 96], strides = [1, 1]} : vector<8x128xf32> to vector<8x96xf32>
    %90 = arith.negf %89 : vector<8x96xf32>
    %91 = math.exp %90 : vector<8x96xf32>
    %cst_38 = arith.constant 1.000000e+00 : f32
    %92 = vector.broadcast %cst_38 : f32 to vector<8x96xf32>
    %93 = arith.addf %92, %91 : vector<8x96xf32>
    %94 = arith.divf %92, %93 : vector<8x96xf32>
    %95 = vector.extract_strided_slice %85 {offsets = [0, 96], sizes = [8, 32], strides = [1, 1]} : vector<8x128xf32> to vector<8x32xf32>
    %96 = math.tanh %95 : vector<8x32xf32>
    %97 = vector.extract_strided_slice %94 {offsets = [0, 0], sizes = [8, 32], strides = [1, 1]} : vector<8x96xf32> to vector<8x32xf32>
    %98 = vector.extract_strided_slice %94 {offsets = [0, 32], sizes = [8, 32], strides = [1, 1]} : vector<8x96xf32> to vector<8x32xf32>
    %99 = vector.extract_strided_slice %94 {offsets = [0, 64], sizes = [8, 32], strides = [1, 1]} : vector<8x96xf32> to vector<8x32xf32>
    %100 = arith.mulf %98, %63 : vector<8x32xf32>
    %101 = arith.mulf %97, %96 : vector<8x32xf32>
    %102 = arith.addf %100, %101 : vector<8x32xf32>
    %103 = math.tanh %102 : vector<8x32xf32>
    %104 = arith.mulf %99, %103 : vector<8x32xf32>
    %105 = vector.extract_strided_slice %88 {offsets = [0, 0], sizes = [8, 96], strides = [1, 1]} : vector<8x128xf32> to vector<8x96xf32>
    %106 = arith.negf %105 : vector<8x96xf32>
    %107 = math.exp %106 : vector<8x96xf32>
    %cst_39 = arith.constant 1.000000e+00 : f32
    %108 = vector.broadcast %cst_39 : f32 to vector<8x96xf32>
    %109 = arith.addf %108, %107 : vector<8x96xf32>
    %110 = arith.divf %108, %109 : vector<8x96xf32>
    %111 = vector.extract_strided_slice %88 {offsets = [0, 96], sizes = [8, 32], strides = [1, 1]} : vector<8x128xf32> to vector<8x32xf32>
    %112 = math.tanh %111 : vector<8x32xf32>
    %113 = vector.extract_strided_slice %110 {offsets = [0, 0], sizes = [8, 32], strides = [1, 1]} : vector<8x96xf32> to vector<8x32xf32>
    %114 = vector.extract_strided_slice %110 {offsets = [0, 32], sizes = [8, 32], strides = [1, 1]} : vector<8x96xf32> to vector<8x32xf32>
    %115 = vector.extract_strided_slice %110 {offsets = [0, 64], sizes = [8, 32], strides = [1, 1]} : vector<8x96xf32> to vector<8x32xf32>
    %116 = arith.mulf %114, %79 : vector<8x32xf32>
    %117 = arith.mulf %113, %112 : vector<8x32xf32>
    %118 = arith.addf %116, %117 : vector<8x32xf32>
    %119 = math.tanh %118 : vector<8x32xf32>
    %120 = arith.mulf %115, %119 : vector<8x32xf32>
    %c0_40 = arith.constant 0 : index
    %c0_41 = arith.constant 0 : index
    %121 = vector.load %arg3[%c0_40, %c0_41] : memref<32x128xf32, #tpu.memory_space<vmem>>, vector<32x128xf32>
    %122 = vector.extract_strided_slice %16 {offsets = [0, 0], sizes = [8, 128], strides = [1, 1]} : vector<16x128xf32> to vector<8x128xf32>
    %cst_42 = arith.constant dense<0.000000e+00> : vector<8x128xf32>
    %123 = tpu.matmul %104, %121, %cst_42 {dimension_numbers = #tpu.dot_dimension_numbers<[1], [0], [0], [1], [0, 0, 1, 1], [], []>} : vector<8x32xf32>, vector<32x128xf32>, vector<8x128xf32> -> vector<8x128xf32>
    %124 = arith.addf %122, %123 : vector<8x128xf32>
    %125 = vector.extract_strided_slice %16 {offsets = [8, 0], sizes = [8, 128], strides = [1, 1]} : vector<16x128xf32> to vector<8x128xf32>
    %cst_43 = arith.constant dense<0.000000e+00> : vector<8x128xf32>
    %126 = tpu.matmul %120, %121, %cst_43 {dimension_numbers = #tpu.dot_dimension_numbers<[1], [0], [0], [1], [0, 0, 1, 1], [], []>} : vector<8x32xf32>, vector<32x128xf32>, vector<8x128xf32> -> vector<8x128xf32>
    %127 = arith.addf %125, %126 : vector<8x128xf32>
    %128 = vector.extract_strided_slice %124 {offsets = [0, 0], sizes = [8, 96], strides = [1, 1]} : vector<8x128xf32> to vector<8x96xf32>
    %129 = arith.negf %128 : vector<8x96xf32>
    %130 = math.exp %129 : vector<8x96xf32>
    %cst_44 = arith.constant 1.000000e+00 : f32
    %131 = vector.broadcast %cst_44 : f32 to vector<8x96xf32>
    %132 = arith.addf %131, %130 : vector<8x96xf32>
    %133 = arith.divf %131, %132 : vector<8x96xf32>
    %134 = vector.extract_strided_slice %124 {offsets = [0, 96], sizes = [8, 32], strides = [1, 1]} : vector<8x128xf32> to vector<8x32xf32>
    %135 = math.tanh %134 : vector<8x32xf32>
    %136 = vector.extract_strided_slice %133 {offsets = [0, 0], sizes = [8, 32], strides = [1, 1]} : vector<8x96xf32> to vector<8x32xf32>
    %137 = vector.extract_strided_slice %133 {offsets = [0, 32], sizes = [8, 32], strides = [1, 1]} : vector<8x96xf32> to vector<8x32xf32>
    %138 = vector.extract_strided_slice %133 {offsets = [0, 64], sizes = [8, 32], strides = [1, 1]} : vector<8x96xf32> to vector<8x32xf32>
    %139 = arith.mulf %137, %102 : vector<8x32xf32>
    %140 = arith.mulf %136, %135 : vector<8x32xf32>
    %141 = arith.addf %139, %140 : vector<8x32xf32>
    %142 = math.tanh %141 : vector<8x32xf32>
    %143 = arith.mulf %138, %142 : vector<8x32xf32>
    %144 = vector.extract_strided_slice %127 {offsets = [0, 0], sizes = [8, 96], strides = [1, 1]} : vector<8x128xf32> to vector<8x96xf32>
    %145 = arith.negf %144 : vector<8x96xf32>
    %146 = math.exp %145 : vector<8x96xf32>
    %cst_45 = arith.constant 1.000000e+00 : f32
    %147 = vector.broadcast %cst_45 : f32 to vector<8x96xf32>
    %148 = arith.addf %147, %146 : vector<8x96xf32>
    %149 = arith.divf %147, %148 : vector<8x96xf32>
    %150 = vector.extract_strided_slice %127 {offsets = [0, 96], sizes = [8, 32], strides = [1, 1]} : vector<8x128xf32> to vector<8x32xf32>
    %151 = math.tanh %150 : vector<8x32xf32>
    %152 = vector.extract_strided_slice %149 {offsets = [0, 0], sizes = [8, 32], strides = [1, 1]} : vector<8x96xf32> to vector<8x32xf32>
    %153 = vector.extract_strided_slice %149 {offsets = [0, 32], sizes = [8, 32], strides = [1, 1]} : vector<8x96xf32> to vector<8x32xf32>
    %154 = vector.extract_strided_slice %149 {offsets = [0, 64], sizes = [8, 32], strides = [1, 1]} : vector<8x96xf32> to vector<8x32xf32>
    %155 = arith.mulf %153, %118 : vector<8x32xf32>
    %156 = arith.mulf %152, %151 : vector<8x32xf32>
    %157 = arith.addf %155, %156 : vector<8x32xf32>
    %158 = math.tanh %157 : vector<8x32xf32>
    %159 = arith.mulf %154, %158 : vector<8x32xf32>
    %c0_46 = arith.constant 0 : index
    %c0_47 = arith.constant 0 : index
    %160 = vector.load %arg3[%c0_46, %c0_47] : memref<32x128xf32, #tpu.memory_space<vmem>>, vector<32x128xf32>
    %161 = vector.extract_strided_slice %21 {offsets = [0, 0], sizes = [8, 128], strides = [1, 1]} : vector<16x128xf32> to vector<8x128xf32>
    %cst_48 = arith.constant dense<0.000000e+00> : vector<8x128xf32>
    %162 = tpu.matmul %143, %160, %cst_48 {dimension_numbers = #tpu.dot_dimension_numbers<[1], [0], [0], [1], [0, 0, 1, 1], [], []>} : vector<8x32xf32>, vector<32x128xf32>, vector<8x128xf32> -> vector<8x128xf32>
    %163 = arith.addf %161, %162 : vector<8x128xf32>
    %164 = vector.extract_strided_slice %21 {offsets = [8, 0], sizes = [8, 128], strides = [1, 1]} : vector<16x128xf32> to vector<8x128xf32>
    %cst_49 = arith.constant dense<0.000000e+00> : vector<8x128xf32>
    %165 = tpu.matmul %159, %160, %cst_49 {dimension_numbers = #tpu.dot_dimension_numbers<[1], [0], [0], [1], [0, 0, 1, 1], [], []>} : vector<8x32xf32>, vector<32x128xf32>, vector<8x128xf32> -> vector<8x128xf32>
    %166 = arith.addf %164, %165 : vector<8x128xf32>
    %167 = vector.extract_strided_slice %163 {offsets = [0, 0], sizes = [8, 96], strides = [1, 1]} : vector<8x128xf32> to vector<8x96xf32>
    %168 = arith.negf %167 : vector<8x96xf32>
    %169 = math.exp %168 : vector<8x96xf32>
    %cst_50 = arith.constant 1.000000e+00 : f32
    %170 = vector.broadcast %cst_50 : f32 to vector<8x96xf32>
    %171 = arith.addf %170, %169 : vector<8x96xf32>
    %172 = arith.divf %170, %171 : vector<8x96xf32>
    %173 = vector.extract_strided_slice %163 {offsets = [0, 96], sizes = [8, 32], strides = [1, 1]} : vector<8x128xf32> to vector<8x32xf32>
    %174 = math.tanh %173 : vector<8x32xf32>
    %175 = vector.extract_strided_slice %172 {offsets = [0, 0], sizes = [8, 32], strides = [1, 1]} : vector<8x96xf32> to vector<8x32xf32>
    %176 = vector.extract_strided_slice %172 {offsets = [0, 32], sizes = [8, 32], strides = [1, 1]} : vector<8x96xf32> to vector<8x32xf32>
    %177 = vector.extract_strided_slice %172 {offsets = [0, 64], sizes = [8, 32], strides = [1, 1]} : vector<8x96xf32> to vector<8x32xf32>
    %178 = arith.mulf %176, %141 : vector<8x32xf32>
    %179 = arith.mulf %175, %174 : vector<8x32xf32>
    %180 = arith.addf %178, %179 : vector<8x32xf32>
    %181 = math.tanh %180 : vector<8x32xf32>
    %182 = arith.mulf %177, %181 : vector<8x32xf32>
    %183 = vector.extract_strided_slice %166 {offsets = [0, 0], sizes = [8, 96], strides = [1, 1]} : vector<8x128xf32> to vector<8x96xf32>
    %184 = arith.negf %183 : vector<8x96xf32>
    %185 = math.exp %184 : vector<8x96xf32>
    %cst_51 = arith.constant 1.000000e+00 : f32
    %186 = vector.broadcast %cst_51 : f32 to vector<8x96xf32>
    %187 = arith.addf %186, %185 : vector<8x96xf32>
    %188 = arith.divf %186, %187 : vector<8x96xf32>
    %189 = vector.extract_strided_slice %166 {offsets = [0, 96], sizes = [8, 32], strides = [1, 1]} : vector<8x128xf32> to vector<8x32xf32>
    %190 = math.tanh %189 : vector<8x32xf32>
    %191 = vector.extract_strided_slice %188 {offsets = [0, 0], sizes = [8, 32], strides = [1, 1]} : vector<8x96xf32> to vector<8x32xf32>
    %192 = vector.extract_strided_slice %188 {offsets = [0, 32], sizes = [8, 32], strides = [1, 1]} : vector<8x96xf32> to vector<8x32xf32>
    %193 = vector.extract_strided_slice %188 {offsets = [0, 64], sizes = [8, 32], strides = [1, 1]} : vector<8x96xf32> to vector<8x32xf32>
    %194 = arith.mulf %192, %157 : vector<8x32xf32>
    %195 = arith.mulf %191, %190 : vector<8x32xf32>
    %196 = arith.addf %194, %195 : vector<8x32xf32>
    %197 = math.tanh %196 : vector<8x32xf32>
    %198 = arith.mulf %193, %197 : vector<8x32xf32>
    %c0_52 = arith.constant 0 : index
    %c0_53 = arith.constant 0 : index
    %199 = vector.load %arg3[%c0_52, %c0_53] : memref<32x128xf32, #tpu.memory_space<vmem>>, vector<32x128xf32>
    %200 = vector.extract_strided_slice %26 {offsets = [0, 0], sizes = [8, 128], strides = [1, 1]} : vector<16x128xf32> to vector<8x128xf32>
    %cst_54 = arith.constant dense<0.000000e+00> : vector<8x128xf32>
    %201 = tpu.matmul %182, %199, %cst_54 {dimension_numbers = #tpu.dot_dimension_numbers<[1], [0], [0], [1], [0, 0, 1, 1], [], []>} : vector<8x32xf32>, vector<32x128xf32>, vector<8x128xf32> -> vector<8x128xf32>
    %202 = arith.addf %200, %201 : vector<8x128xf32>
    %203 = vector.extract_strided_slice %26 {offsets = [8, 0], sizes = [8, 128], strides = [1, 1]} : vector<16x128xf32> to vector<8x128xf32>
    %cst_55 = arith.constant dense<0.000000e+00> : vector<8x128xf32>
    %204 = tpu.matmul %198, %199, %cst_55 {dimension_numbers = #tpu.dot_dimension_numbers<[1], [0], [0], [1], [0, 0, 1, 1], [], []>} : vector<8x32xf32>, vector<32x128xf32>, vector<8x128xf32> -> vector<8x128xf32>
    %205 = arith.addf %203, %204 : vector<8x128xf32>
    %206 = vector.extract_strided_slice %202 {offsets = [0, 0], sizes = [8, 96], strides = [1, 1]} : vector<8x128xf32> to vector<8x96xf32>
    %207 = arith.negf %206 : vector<8x96xf32>
    %208 = math.exp %207 : vector<8x96xf32>
    %cst_56 = arith.constant 1.000000e+00 : f32
    %209 = vector.broadcast %cst_56 : f32 to vector<8x96xf32>
    %210 = arith.addf %209, %208 : vector<8x96xf32>
    %211 = arith.divf %209, %210 : vector<8x96xf32>
    %212 = vector.extract_strided_slice %202 {offsets = [0, 96], sizes = [8, 32], strides = [1, 1]} : vector<8x128xf32> to vector<8x32xf32>
    %213 = math.tanh %212 : vector<8x32xf32>
    %214 = vector.extract_strided_slice %211 {offsets = [0, 0], sizes = [8, 32], strides = [1, 1]} : vector<8x96xf32> to vector<8x32xf32>
    %215 = vector.extract_strided_slice %211 {offsets = [0, 32], sizes = [8, 32], strides = [1, 1]} : vector<8x96xf32> to vector<8x32xf32>
    %216 = vector.extract_strided_slice %211 {offsets = [0, 64], sizes = [8, 32], strides = [1, 1]} : vector<8x96xf32> to vector<8x32xf32>
    %217 = arith.mulf %215, %180 : vector<8x32xf32>
    %218 = arith.mulf %214, %213 : vector<8x32xf32>
    %219 = arith.addf %217, %218 : vector<8x32xf32>
    %220 = math.tanh %219 : vector<8x32xf32>
    %221 = arith.mulf %216, %220 : vector<8x32xf32>
    %222 = vector.extract_strided_slice %205 {offsets = [0, 0], sizes = [8, 96], strides = [1, 1]} : vector<8x128xf32> to vector<8x96xf32>
    %223 = arith.negf %222 : vector<8x96xf32>
    %224 = math.exp %223 : vector<8x96xf32>
    %cst_57 = arith.constant 1.000000e+00 : f32
    %225 = vector.broadcast %cst_57 : f32 to vector<8x96xf32>
    %226 = arith.addf %225, %224 : vector<8x96xf32>
    %227 = arith.divf %225, %226 : vector<8x96xf32>
    %228 = vector.extract_strided_slice %205 {offsets = [0, 96], sizes = [8, 32], strides = [1, 1]} : vector<8x128xf32> to vector<8x32xf32>
    %229 = math.tanh %228 : vector<8x32xf32>
    %230 = vector.extract_strided_slice %227 {offsets = [0, 0], sizes = [8, 32], strides = [1, 1]} : vector<8x96xf32> to vector<8x32xf32>
    %231 = vector.extract_strided_slice %227 {offsets = [0, 32], sizes = [8, 32], strides = [1, 1]} : vector<8x96xf32> to vector<8x32xf32>
    %232 = vector.extract_strided_slice %227 {offsets = [0, 64], sizes = [8, 32], strides = [1, 1]} : vector<8x96xf32> to vector<8x32xf32>
    %233 = arith.mulf %231, %196 : vector<8x32xf32>
    %234 = arith.mulf %230, %229 : vector<8x32xf32>
    %235 = arith.addf %233, %234 : vector<8x32xf32>
    %236 = math.tanh %235 : vector<8x32xf32>
    %237 = arith.mulf %232, %236 : vector<8x32xf32>
    %c0_58 = arith.constant 0 : index
    %c0_59 = arith.constant 0 : index
    %238 = vector.load %arg3[%c0_58, %c0_59] : memref<32x128xf32, #tpu.memory_space<vmem>>, vector<32x128xf32>
    %239 = vector.extract_strided_slice %31 {offsets = [0, 0], sizes = [8, 128], strides = [1, 1]} : vector<16x128xf32> to vector<8x128xf32>
    %cst_60 = arith.constant dense<0.000000e+00> : vector<8x128xf32>
    %240 = tpu.matmul %221, %238, %cst_60 {dimension_numbers = #tpu.dot_dimension_numbers<[1], [0], [0], [1], [0, 0, 1, 1], [], []>} : vector<8x32xf32>, vector<32x128xf32>, vector<8x128xf32> -> vector<8x128xf32>
    %241 = arith.addf %239, %240 : vector<8x128xf32>
    %242 = vector.extract_strided_slice %31 {offsets = [8, 0], sizes = [8, 128], strides = [1, 1]} : vector<16x128xf32> to vector<8x128xf32>
    %cst_61 = arith.constant dense<0.000000e+00> : vector<8x128xf32>
    %243 = tpu.matmul %237, %238, %cst_61 {dimension_numbers = #tpu.dot_dimension_numbers<[1], [0], [0], [1], [0, 0, 1, 1], [], []>} : vector<8x32xf32>, vector<32x128xf32>, vector<8x128xf32> -> vector<8x128xf32>
    %244 = arith.addf %242, %243 : vector<8x128xf32>
    %245 = vector.extract_strided_slice %241 {offsets = [0, 0], sizes = [8, 96], strides = [1, 1]} : vector<8x128xf32> to vector<8x96xf32>
    %246 = arith.negf %245 : vector<8x96xf32>
    %247 = math.exp %246 : vector<8x96xf32>
    %cst_62 = arith.constant 1.000000e+00 : f32
    %248 = vector.broadcast %cst_62 : f32 to vector<8x96xf32>
    %249 = arith.addf %248, %247 : vector<8x96xf32>
    %250 = arith.divf %248, %249 : vector<8x96xf32>
    %251 = vector.extract_strided_slice %241 {offsets = [0, 96], sizes = [8, 32], strides = [1, 1]} : vector<8x128xf32> to vector<8x32xf32>
    %252 = math.tanh %251 : vector<8x32xf32>
    %253 = vector.extract_strided_slice %250 {offsets = [0, 0], sizes = [8, 32], strides = [1, 1]} : vector<8x96xf32> to vector<8x32xf32>
    %254 = vector.extract_strided_slice %250 {offsets = [0, 32], sizes = [8, 32], strides = [1, 1]} : vector<8x96xf32> to vector<8x32xf32>
    %255 = vector.extract_strided_slice %250 {offsets = [0, 64], sizes = [8, 32], strides = [1, 1]} : vector<8x96xf32> to vector<8x32xf32>
    %256 = arith.mulf %254, %219 : vector<8x32xf32>
    %257 = arith.mulf %253, %252 : vector<8x32xf32>
    %258 = arith.addf %256, %257 : vector<8x32xf32>
    %259 = math.tanh %258 : vector<8x32xf32>
    %260 = arith.mulf %255, %259 : vector<8x32xf32>
    %261 = vector.extract_strided_slice %244 {offsets = [0, 0], sizes = [8, 96], strides = [1, 1]} : vector<8x128xf32> to vector<8x96xf32>
    %262 = arith.negf %261 : vector<8x96xf32>
    %263 = math.exp %262 : vector<8x96xf32>
    %cst_63 = arith.constant 1.000000e+00 : f32
    %264 = vector.broadcast %cst_63 : f32 to vector<8x96xf32>
    %265 = arith.addf %264, %263 : vector<8x96xf32>
    %266 = arith.divf %264, %265 : vector<8x96xf32>
    %267 = vector.extract_strided_slice %244 {offsets = [0, 96], sizes = [8, 32], strides = [1, 1]} : vector<8x128xf32> to vector<8x32xf32>
    %268 = math.tanh %267 : vector<8x32xf32>
    %269 = vector.extract_strided_slice %266 {offsets = [0, 0], sizes = [8, 32], strides = [1, 1]} : vector<8x96xf32> to vector<8x32xf32>
    %270 = vector.extract_strided_slice %266 {offsets = [0, 32], sizes = [8, 32], strides = [1, 1]} : vector<8x96xf32> to vector<8x32xf32>
    %271 = vector.extract_strided_slice %266 {offsets = [0, 64], sizes = [8, 32], strides = [1, 1]} : vector<8x96xf32> to vector<8x32xf32>
    %272 = arith.mulf %270, %235 : vector<8x32xf32>
    %273 = arith.mulf %269, %268 : vector<8x32xf32>
    %274 = arith.addf %272, %273 : vector<8x32xf32>
    %275 = math.tanh %274 : vector<8x32xf32>
    %276 = arith.mulf %271, %275 : vector<8x32xf32>
    %c0_64 = arith.constant 0 : index
    %c0_65 = arith.constant 0 : index
    %277 = vector.load %arg3[%c0_64, %c0_65] : memref<32x128xf32, #tpu.memory_space<vmem>>, vector<32x128xf32>
    %278 = vector.extract_strided_slice %36 {offsets = [0, 0], sizes = [8, 128], strides = [1, 1]} : vector<16x128xf32> to vector<8x128xf32>
    %cst_66 = arith.constant dense<0.000000e+00> : vector<8x128xf32>
    %279 = tpu.matmul %260, %277, %cst_66 {dimension_numbers = #tpu.dot_dimension_numbers<[1], [0], [0], [1], [0, 0, 1, 1], [], []>} : vector<8x32xf32>, vector<32x128xf32>, vector<8x128xf32> -> vector<8x128xf32>
    %280 = arith.addf %278, %279 : vector<8x128xf32>
    %281 = vector.extract_strided_slice %36 {offsets = [8, 0], sizes = [8, 128], strides = [1, 1]} : vector<16x128xf32> to vector<8x128xf32>
    %cst_67 = arith.constant dense<0.000000e+00> : vector<8x128xf32>
    %282 = tpu.matmul %276, %277, %cst_67 {dimension_numbers = #tpu.dot_dimension_numbers<[1], [0], [0], [1], [0, 0, 1, 1], [], []>} : vector<8x32xf32>, vector<32x128xf32>, vector<8x128xf32> -> vector<8x128xf32>
    %283 = arith.addf %281, %282 : vector<8x128xf32>
    %284 = vector.extract_strided_slice %280 {offsets = [0, 0], sizes = [8, 96], strides = [1, 1]} : vector<8x128xf32> to vector<8x96xf32>
    %285 = arith.negf %284 : vector<8x96xf32>
    %286 = math.exp %285 : vector<8x96xf32>
    %cst_68 = arith.constant 1.000000e+00 : f32
    %287 = vector.broadcast %cst_68 : f32 to vector<8x96xf32>
    %288 = arith.addf %287, %286 : vector<8x96xf32>
    %289 = arith.divf %287, %288 : vector<8x96xf32>
    %290 = vector.extract_strided_slice %280 {offsets = [0, 96], sizes = [8, 32], strides = [1, 1]} : vector<8x128xf32> to vector<8x32xf32>
    %291 = math.tanh %290 : vector<8x32xf32>
    %292 = vector.extract_strided_slice %289 {offsets = [0, 0], sizes = [8, 32], strides = [1, 1]} : vector<8x96xf32> to vector<8x32xf32>
    %293 = vector.extract_strided_slice %289 {offsets = [0, 32], sizes = [8, 32], strides = [1, 1]} : vector<8x96xf32> to vector<8x32xf32>
    %294 = vector.extract_strided_slice %289 {offsets = [0, 64], sizes = [8, 32], strides = [1, 1]} : vector<8x96xf32> to vector<8x32xf32>
    %295 = arith.mulf %293, %258 : vector<8x32xf32>
    %296 = arith.mulf %292, %291 : vector<8x32xf32>
    %297 = arith.addf %295, %296 : vector<8x32xf32>
    %298 = math.tanh %297 : vector<8x32xf32>
    %299 = arith.mulf %294, %298 : vector<8x32xf32>
    %300 = vector.extract_strided_slice %283 {offsets = [0, 0], sizes = [8, 96], strides = [1, 1]} : vector<8x128xf32> to vector<8x96xf32>
    %301 = arith.negf %300 : vector<8x96xf32>
    %302 = math.exp %301 : vector<8x96xf32>
    %cst_69 = arith.constant 1.000000e+00 : f32
    %303 = vector.broadcast %cst_69 : f32 to vector<8x96xf32>
    %304 = arith.addf %303, %302 : vector<8x96xf32>
    %305 = arith.divf %303, %304 : vector<8x96xf32>
    %306 = vector.extract_strided_slice %283 {offsets = [0, 96], sizes = [8, 32], strides = [1, 1]} : vector<8x128xf32> to vector<8x32xf32>
    %307 = math.tanh %306 : vector<8x32xf32>
    %308 = vector.extract_strided_slice %305 {offsets = [0, 0], sizes = [8, 32], strides = [1, 1]} : vector<8x96xf32> to vector<8x32xf32>
    %309 = vector.extract_strided_slice %305 {offsets = [0, 32], sizes = [8, 32], strides = [1, 1]} : vector<8x96xf32> to vector<8x32xf32>
    %310 = vector.extract_strided_slice %305 {offsets = [0, 64], sizes = [8, 32], strides = [1, 1]} : vector<8x96xf32> to vector<8x32xf32>
    %311 = arith.mulf %309, %274 : vector<8x32xf32>
    %312 = arith.mulf %308, %307 : vector<8x32xf32>
    %313 = arith.addf %311, %312 : vector<8x32xf32>
    %314 = math.tanh %313 : vector<8x32xf32>
    %315 = arith.mulf %310, %314 : vector<8x32xf32>
    %c0_70 = arith.constant 0 : index
    %c0_71 = arith.constant 0 : index
    %316 = vector.load %arg3[%c0_70, %c0_71] : memref<32x128xf32, #tpu.memory_space<vmem>>, vector<32x128xf32>
    %317 = vector.extract_strided_slice %41 {offsets = [0, 0], sizes = [8, 128], strides = [1, 1]} : vector<16x128xf32> to vector<8x128xf32>
    %cst_72 = arith.constant dense<0.000000e+00> : vector<8x128xf32>
    %318 = tpu.matmul %299, %316, %cst_72 {dimension_numbers = #tpu.dot_dimension_numbers<[1], [0], [0], [1], [0, 0, 1, 1], [], []>} : vector<8x32xf32>, vector<32x128xf32>, vector<8x128xf32> -> vector<8x128xf32>
    %319 = arith.addf %317, %318 : vector<8x128xf32>
    %320 = vector.extract_strided_slice %41 {offsets = [8, 0], sizes = [8, 128], strides = [1, 1]} : vector<16x128xf32> to vector<8x128xf32>
    %cst_73 = arith.constant dense<0.000000e+00> : vector<8x128xf32>
    %321 = tpu.matmul %315, %316, %cst_73 {dimension_numbers = #tpu.dot_dimension_numbers<[1], [0], [0], [1], [0, 0, 1, 1], [], []>} : vector<8x32xf32>, vector<32x128xf32>, vector<8x128xf32> -> vector<8x128xf32>
    %322 = arith.addf %320, %321 : vector<8x128xf32>
    %323 = vector.extract_strided_slice %319 {offsets = [0, 0], sizes = [8, 96], strides = [1, 1]} : vector<8x128xf32> to vector<8x96xf32>
    %324 = arith.negf %323 : vector<8x96xf32>
    %325 = math.exp %324 : vector<8x96xf32>
    %cst_74 = arith.constant 1.000000e+00 : f32
    %326 = vector.broadcast %cst_74 : f32 to vector<8x96xf32>
    %327 = arith.addf %326, %325 : vector<8x96xf32>
    %328 = arith.divf %326, %327 : vector<8x96xf32>
    %329 = vector.extract_strided_slice %319 {offsets = [0, 96], sizes = [8, 32], strides = [1, 1]} : vector<8x128xf32> to vector<8x32xf32>
    %330 = math.tanh %329 : vector<8x32xf32>
    %331 = vector.extract_strided_slice %328 {offsets = [0, 0], sizes = [8, 32], strides = [1, 1]} : vector<8x96xf32> to vector<8x32xf32>
    %332 = vector.extract_strided_slice %328 {offsets = [0, 32], sizes = [8, 32], strides = [1, 1]} : vector<8x96xf32> to vector<8x32xf32>
    %333 = vector.extract_strided_slice %328 {offsets = [0, 64], sizes = [8, 32], strides = [1, 1]} : vector<8x96xf32> to vector<8x32xf32>
    %334 = arith.mulf %332, %297 : vector<8x32xf32>
    %335 = arith.mulf %331, %330 : vector<8x32xf32>
    %336 = arith.addf %334, %335 : vector<8x32xf32>
    %337 = math.tanh %336 : vector<8x32xf32>
    %338 = arith.mulf %333, %337 : vector<8x32xf32>
    %339 = vector.extract_strided_slice %322 {offsets = [0, 0], sizes = [8, 96], strides = [1, 1]} : vector<8x128xf32> to vector<8x96xf32>
    %340 = arith.negf %339 : vector<8x96xf32>
    %341 = math.exp %340 : vector<8x96xf32>
    %cst_75 = arith.constant 1.000000e+00 : f32
    %342 = vector.broadcast %cst_75 : f32 to vector<8x96xf32>
    %343 = arith.addf %342, %341 : vector<8x96xf32>
    %344 = arith.divf %342, %343 : vector<8x96xf32>
    %345 = vector.extract_strided_slice %322 {offsets = [0, 96], sizes = [8, 32], strides = [1, 1]} : vector<8x128xf32> to vector<8x32xf32>
    %346 = math.tanh %345 : vector<8x32xf32>
    %347 = vector.extract_strided_slice %344 {offsets = [0, 0], sizes = [8, 32], strides = [1, 1]} : vector<8x96xf32> to vector<8x32xf32>
    %348 = vector.extract_strided_slice %344 {offsets = [0, 32], sizes = [8, 32], strides = [1, 1]} : vector<8x96xf32> to vector<8x32xf32>
    %349 = vector.extract_strided_slice %344 {offsets = [0, 64], sizes = [8, 32], strides = [1, 1]} : vector<8x96xf32> to vector<8x32xf32>
    %350 = arith.mulf %348, %313 : vector<8x32xf32>
    %351 = arith.mulf %347, %346 : vector<8x32xf32>
    %352 = arith.addf %350, %351 : vector<8x32xf32>
    %353 = math.tanh %352 : vector<8x32xf32>
    %354 = arith.mulf %349, %353 : vector<8x32xf32>
    %355 = tpu.concatenate %338, %354 in 0 : vector<8x32xf32>, vector<8x32xf32> -> vector<16x32xf32>
    %c0_76 = arith.constant 0 : index
    %c0_77 = arith.constant 0 : index
    %356 = vector.load %arg7[%c0_76, %c0_77] : memref<16x32xf32, #tpu.memory_space<vmem>>, vector<16x32xf32>
    tpu.vector_store %arg7[%c0_76, %c0_77], %355 {strides = array<i32>} : memref<16x32xf32, #tpu.memory_space<vmem>>, vector<16x32xf32>,
    %cst_78 = arith.constant 0.000000e+00 : f32
    %357 = vector.broadcast %cst_78 : f32 to vector<16x32xf32>
    %358 = arith.maximumf %355, %357 : vector<16x32xf32>
    %c0_79 = arith.constant 0 : index
    %c0_80 = arith.constant 0 : index
    %359 = vector.load %arg5[%c0_79, %c0_80] : memref<32x64xf32, #tpu.memory_space<vmem>>, vector<32x64xf32>
    %cst_81 = arith.constant dense<0.000000e+00> : vector<16x64xf32>
    %360 = tpu.matmul %358, %359, %cst_81 {dimension_numbers = #tpu.dot_dimension_numbers<[1], [0], [0], [1], [0, 0, 1, 1], [], []>} : vector<16x32xf32>, vector<32x64xf32>, vector<16x64xf32> -> vector<16x64xf32>
    %c0_82 = arith.constant 0 : index
    %c0_83 = arith.constant 0 : index
    %361 = vector.load %arg6[%c0_82, %c0_83] : memref<1x64xf32, #tpu.memory_space<vmem>>, vector<1x64xf32>
    %362 = vector.broadcast %361 : vector<1x64xf32> to vector<16x64xf32>
    %363 = arith.addf %360, %362 : vector<16x64xf32>
    %c0_84 = arith.constant 0 : index
    %c0_85 = arith.constant 0 : index
    %364 = vector.load %arg8[%c0_84, %c0_85] : memref<16x64xf32, #tpu.memory_space<vmem>>, vector<16x64xf32>
    tpu.vector_store %arg8[%c0_84, %c0_85], %363 {strides = array<i32>} : memref<16x64xf32, #tpu.memory_space<vmem>>, vector<16x64xf32>,
    return
  }
  func.func @transform_0(%arg0: i32) -> (i32, i32, i32) {
    %c0_i32 = arith.constant 0 : i32
    %c0_i32_0 = arith.constant 0 : i32
    %c0_i32_1 = arith.constant 0 : i32
    return %c0_i32, %arg0, %c0_i32_0 : i32, i32, i32
  }
  func.func @transform_1(%arg0: i32) -> (i32, i32) {
    %c0_i32 = arith.constant 0 : i32
    %c0_i32_0 = arith.constant 0 : i32
    %c0_i32_1 = arith.constant 0 : i32
    return %c0_i32, %c0_i32_0 : i32, i32
  }
  func.func @transform_2(%arg0: i32) -> (i32, i32) {
    %c0_i32 = arith.constant 0 : i32
    %c0_i32_0 = arith.constant 0 : i32
    %c0_i32_1 = arith.constant 0 : i32
    return %c0_i32, %c0_i32_0 : i32, i32
  }
  func.func @transform_3(%arg0: i32) -> (i32, i32) {
    %c0_i32 = arith.constant 0 : i32
    %c0_i32_0 = arith.constant 0 : i32
    %c0_i32_1 = arith.constant 0 : i32
    return %c0_i32, %c0_i32_0 : i32, i32
  }
  func.func @transform_4(%arg0: i32) -> (i32, i32) {
    %c0_i32 = arith.constant 0 : i32
    %c0_i32_0 = arith.constant 0 : i32
    %c0_i32_1 = arith.constant 0 : i32
    return %c0_i32, %c0_i32_0 : i32, i32
  }
  func.func @transform_5(%arg0: i32) -> (i32, i32) {
    %c0_i32 = arith.constant 0 : i32
    %c0_i32_0 = arith.constant 0 : i32
    %c0_i32_1 = arith.constant 0 : i32
    return %c0_i32, %c0_i32_0 : i32, i32
  }
  func.func @transform_6(%arg0: i32) -> (i32, i32) {
    %c0_i32 = arith.constant 0 : i32
    %c0_i32_0 = arith.constant 0 : i32
    return %arg0, %c0_i32 : i32, i32
  }
  func.func @transform_7(%arg0: i32) -> (i32, i32) {
    %c0_i32 = arith.constant 0 : i32
    %c0_i32_0 = arith.constant 0 : i32
    return %arg0, %c0_i32 : i32, i32
  }
}

</mosaic_0001>

<bundles_post_ra>
// kernel: lstm_classifier_forward.1
= control target key start
LH: loop header
LB: loop body
LE: loop exit
PB: predicated region body
PF: predicated region fallthrough
CT: control target
= control target key end

     0   :  { %vm42_vm0 = vcmask 1043456   ;;  %vm35_vm1 = vcmask 31744   ;;  %v2980_v12 = vmov 0.0|0.0   ;;  %vm2981_vm2 = vmmov 0   ;;  %s2983_s27 = smov 32   ;;  %s3409_s1 = inlined_call_operand.vmem [shape: f32[4,128], index: 1, kind: input, shape index: {}]   ;;  %s3410_s0 = inlined_call_operand.vmem [shape: f32[8,16,4], index: 0, kind: input, shape index: {}]   ;;  %s3411_s2 = inlined_call_operand.vmem [shape: f32[32,128], index: 2, kind: input, shape index: {}]   ;;  %s3412_s3 = inlined_call_operand.vmem [shape: f32[1,128], index: 3, kind: input, shape index: {}]   ;;  %s3413_s4 = inlined_call_operand.vmem [shape: f32[32,64], index: 4, kind: input, shape index: {}]   ;;  %s3414_s6 = inlined_call_operand.vmem [shape: f32[16,32], index: 6, kind: output, shape index: {0}]   ;;  %s3415_s5 = inlined_call_operand.vmem [shape: f32[1,64], index: 5, kind: input, shape index: {}]   ;;  %s3416_s7 = inlined_call_operand.vmem [shape: f32[16,64], index: 7, kind: output, shape index: {1}]  }
   0x1   :  { %v3028_v0 = vld [vmem:[%s3409_s1] sm:$0xf]  ;;  %v28_v2 = vld [vmem:[%s3410_s0 + $0x8] sm:$0xff]  ;;  %v711_v13 = vld [vmem:[%s3411_s2 + $0x10] sm:$0xff]  ;;  %v2982_v16 = vmov 0.0   ;;  %vm713_vm3 = vcmask 261120  }
   0x2   :  { %v27_v1 = vld [vmem:[%s3410_s0] sm:$0xff]  ;;  %2533 = vmatprep.subr.msk.mxu0 %vm42_vm0, %v3028_v0  ;;  %2538 = vmatprep.subr.msk.mxu1 %vm42_vm0, %v3028_v0  ;;  %v2366_v4 = vld [vmem:[%s3410_s0 + $0x28] sm:$0xff]  ;;  %v712_v14 = vld [vmem:[%s3411_s2 + $0x18] sm:$0xff]  ;;  %vm2345_vm4 = vcmask 523264  }
   0x3   :  { %2535 = vmatprep.mubr.msk.f32.mxu0 %vm35_vm1, %v27_v1  ;;  %v2365_v3 = vld [vmem:[%s3410_s0 + $0x20] sm:$0xff]  ;;  %2534 = vmatpush3.msk.msra.mxu0 %vm42_vm0, %v3028_v0  ;;  %v2376_v6 = vld [vmem:[%s3410_s0 + $0x48] sm:$0xff]  ;;  %v3100_v15 = vpack.c.bf16 %v712_v14, %v711_v13  ;;  %v2360_v52 = vld [vmem:[%s3410_s0 + $0x10] sm:$0xff] }
   0x4   :  { %2536 = vmatmul.mubr.msk.f32.vlgmr.msra.gmra.mrb[0].mxu0 %vm35_vm1, %v28_v2  ;;  %2543 = vmatprep.subr.msk.mxu0 %vm42_vm0, %v3028_v0  ;;  %v2375_v5 = vld [vmem:[%s3410_s0 + $0x40] sm:$0xff]  ;;  %v710_v9 = vld [vmem:[%s3411_s2 + $0x8] sm:$0xff]  ;;  %v2361_v53 = vld [vmem:[%s3410_s0 + $0x18] sm:$0xff] }
   0x5   :  { %2544 = vmatpush3.msk.msra.mxu0 %vm42_vm0, %v3028_v0  ;;  %2545 = vmatprep.mubr.msk.f32.mxu0 %vm35_vm1, %v2365_v3  ;;  %v2385_v7 = vld [vmem:[%s3410_s0 + $0x60] sm:$0xff]  ;;  %v2386_v10 = vld [vmem:[%s3410_s0 + $0x68] sm:$0xff]  ;;  %v2370_v54 = vld [vmem:[%s3410_s0 + $0x30] sm:$0xff] }
   0x6   :  { %2553 = vmatprep.subr.msk.mxu0 %vm42_vm0, %v3028_v0  ;;  %2539 = vmatpush3.msk.msra.mxu1 %vm42_vm0, %v3028_v0  ;;  %v709_v8 = vld [vmem:[%s3411_s2] sm:$0xff]  ;;  %v2371_v55 = vld [vmem:[%s3410_s0 + $0x38] sm:$0xff]  ;;  %v2380_v56 = vld [vmem:[%s3410_s0 + $0x50] sm:$0xff] }
   0x7   :  { %2548 = vmatprep.subr.msk.mxu1 %vm42_vm0, %v3028_v0  ;;  %v3089_v11 = vpack.c.bf16 %v710_v9, %v709_v8  ;;  %v3129_v25 = vld [vmem:[%s3412_s3] ss:$0 sm:$0xff]  ;;  %2540 = vmatprep.mubr.msk.f32.mxu1 %vm35_vm1, %v2360_v52  ;;  %v2381_v58 = vld [vmem:[%s3410_s0 + $0x58] sm:$0xff]  ;;  %v2390_v59 = vld [vmem:[%s3410_s0 + $0x70] sm:$0xff] }
   0x8   :  { %2546 = vmatmul.mubr.msk.f32.vlgmr.msra.gmra.mrb[2].mxu0 %vm35_vm1, %v2366_v4  ;;  %2541 = vmatmul.mubr.msk.f32.vlgmr.msra.gmra.mrb[0].mxu1 %vm35_vm1, %v2361_v53  ;;  %v2391_v61 = vld [vmem:[%s3410_s0 + $0x78] sm:$0xff]  ;;  %s2984_s0 = smov 64  }
   0x9   :  { %2554 = vmatpush3.msk.msra.mxu0 %vm42_vm0, %v3028_v0  ;;  %2555 = vmatprep.mubr.msk.f32.mxu0 %vm35_vm1, %v2375_v5 }
   0xa   :  { %2563 = vmatprep.subr.msk.mxu0 %vm42_vm0, %v3028_v0  ;;  %2549 = vmatpush3.msk.msra.mxu1 %vm42_vm0, %v3028_v0 }
   0xb   :  { %2550 = vmatprep.mubr.msk.f32.mxu1 %vm35_vm1, %v2370_v54  ;;  %2558 = vmatprep.subr.msk.mxu1 %vm42_vm0, %v3028_v0 }
   0xc   :  { %2556 = vmatmul.mubr.msk.f32.vlgmr.msra.gmra.mrb[4].mxu0 %vm35_vm1, %v2376_v6  ;;  %2551 = vmatmul.mubr.msk.f32.vlgmr.msra.gmra.mrb[2].mxu1 %vm35_vm1, %v2371_v55 }
   0xd   :  { %2564 = vmatpush3.msk.msra.mxu0 %vm42_vm0, %v3028_v0  ;;  %2565 = vmatprep.mubr.msk.f32.mxu0 %vm35_vm1, %v2385_v7 }
   0xe   :  { %2749 = vmatprep.subr.bf16.mxu0 %v2980_v12  ;;  %2559 = vmatpush3.msk.msra.mxu1 %vm42_vm0, %v3028_v0 }
   0xf   :  { %2560 = vmatprep.mubr.msk.f32.mxu1 %vm35_vm1, %v2380_v56  ;;  %2568 = vmatprep.subr.msk.mxu1 %vm42_vm0, %v3028_v0 }
  0x10   :  { %2566 = vmatmul.mubr.msk.f32.vlgmr.msra.gmra.mrb[6].mxu0 %vm35_vm1, %v2386_v10  ;;  %2561 = vmatmul.mubr.msk.f32.vlgmr.msra.gmra.mrb[4].mxu1 %vm35_vm1, %v2381_v58 }
  0x11   :  { %2751 = vmatpush3.bf16.msra.mxu0 %v3089_v11  ;;  %2581 = vmatprep.mubr.msk.f32.mxu0 %vm2981_vm2, %v2982_v16 }
  0x12   :  { %2752 = vmatprep.subr.bf16.mxu0 %v2980_v12  ;;  %2569 = vmatpush3.msk.msra.mxu1 %vm42_vm0, %v3028_v0 }
  0x13   :  { %2570 = vmatprep.mubr.msk.f32.mxu1 %vm35_vm1, %v2390_v59  ;;  %2755 = vmatprep.subr.bf16.mxu1 %v2980_v12 }
  0x14   :  { %2571 = vmatmul.mubr.msk.f32.vlgmr.msra.gmra.mrb[6].mxu1 %vm35_vm1, %v2391_v61 }
  0x15   :  { %2754 = vmatpush3.bf16.msra.mxu0 %v3100_v15  ;;  %2757 = vmatpush3.bf16.msra.mxu1 %v3089_v11 }
  0x16   :  { %2761 = vmatprep.subr.bf16.mxu0 %v2980_v12  ;;  %2592 = vmatprep.mubr.msk.f32.mxu1 %vm2981_vm2, %v2982_v16 }
  0x17   :  { %2758 = vmatprep.subr.bf16.mxu1 %v2980_v12 }
  0x18   :  { %2582 = vmatmul.mubr.f32.vlgmr.msra.gmra.mrb[8].mxu0 %v2982_v16 }
  0x19   :  { %2763 = vmatpush3.bf16.msra.mxu0 %v3089_v11  ;;  %2603 = vmatprep.mubr.msk.f32.mxu0 %vm2981_vm2, %v2982_v16 }
  0x1a   :  { %2764 = vmatprep.subr.bf16.mxu0 %v2980_v12  ;;  %2760 = vmatpush3.bf16.msra.mxu1 %v3100_v15 }
  0x1b   :  { %2767 = vmatprep.subr.bf16.mxu1 %v2980_v12 }
  0x1d   :  { %2766 = vmatpush3.bf16.msra.mxu0 %v3100_v15 }
  0x1e   :  { %2773 = vmatprep.subr.bf16.mxu0 %v2980_v12 }
  0xd7   :  { %v2537_v17 = vpop.f32.mrb[0].mxu0 }
  0xd8   :  { %v112_v18 = vpop.f32.mrb[1].mxu0  ;;  %v118_v26 = vadd.f32 %v2537_v17, %v3129_v25 }
  0xd9   :  { %v113_v27 = vadd.f32 %v3129_v25, %v112_v18 }
  0xdb   :  { %v3114_v19 = vpop.f32.mrb[2].mxu0  ;;  %v2542_v2 = vpop.f32.mrb[0].mxu1 }
  0xdc   :  { %v3116_v20 = vpop.f32.mrb[3].mxu0  ;;  %v196_v3 = vpop.f32.mrb[1].mxu1 }
  0xdd   :  { %v197_v14 = vadd.f32 %v3129_v25, %v196_v3  ;;  %v281_v59 = vadd.f32 %v3129_v25, %v3116_v20 }
  0xdf   :  { %v3118_v21 = vpop.f32.mrb[4].mxu0  ;;  %v3196_v4 = vpop.f32.mrb[2].mxu1 }
  0xe0   :  { %v3120_v22 = vpop.f32.mrb[5].mxu0  ;;  %v3198_v5 = vpop.f32.mrb[3].mxu1 }
  0xe3   :  { %v3122_v23 = vpop.f32.mrb[6].mxu0  ;;  %v3200_v6 = vpop.f32.mrb[4].mxu1 }
  0xe4   :  { %v3124_v24 = vpop.f32.mrb[7].mxu0  ;;  %v3202_v7 = vpop.f32.mrb[5].mxu1 }
  0xe7   :  { %v3204_v8 = vpop.f32.mrb[6].mxu1 }
  0xe8   :  { %v3206_v9 = vpop.f32.mrb[7].mxu1 }
  0xeb   :  { %v783_v28 = vpop.f32.mrb[8].mxu0 }
  0xec   :  { %v787_v29 = vadd.f32 %v783_v28, %v113_v27  ;;  %v788_v30 = vadd.f32 %v783_v28, %v118_v26  ;;  %v2583_v31 = vpop.f32.mrb[9].mxu0  ;;  %v202_v27 = vadd.f32 %v2542_v2, %v3129_v25 }
  0xee   :  { %2852 = vtanh.f32 %v787_v29  ;;  %v2395_v34 = vmul.f32 -1.442695, %v787_v29  ;;  %v2396_v35 = vmul.f32 -1.442695, %v788_v30 }
  0xef   :  { %2854 = vtanh.f32 %v788_v30 }
  0xf0   :  { %2856 = vpow2.f32 %v2395_v34 }
  0xf1   :  { %2858 = vpow2.f32 %v2396_v35 }
  0xf8   :  { %v2853_v32 = vpop.eup %2852 }
  0xf9   :  { %798 = vrot.lane.b32.xlu0 %v2853_v32, %s2983_s27  ;;  %v2855_v33 = vpop.eup %2854 }
  0xfa   :  { %v2857_v36 = vpop.eup %2856 }
  0xfb   :  { %v792_v37 = vadd.f32 1.0, %v2857_v36  ;;  %v2859_v38 = vpop.eup %2858 }
  0xfc   :  { %v816_v39 = vadd.f32 1.0, %v2859_v38 }
  0xfd   :  { %822 = vrot.lane.b32.xlu0 %v2855_v33, %s2983_s27  ;;  %2860 = vrcp.f32 %v792_v37 }
  0xfe   :  { %2862 = vrcp.f32 %v816_v39 }
 0x107   :  { %v2861_v40 = vpop.eup %2860 }
 0x108   :  { %v2863_v43 = vpop.eup %2862  ;;  %v796_v46 = vmul.f32 0.0, %v2861_v40 }
 0x109   :  { %v820_v49 = vmul.f32 0.0, %v2863_v43 }
 0x16b   :  { %v799_v41 = vpop.permute.xlu0 %798 }
 0x16c   :  { %v801_v42 = vmul.f32 %v2861_v40, %v799_v41 }
 0x16e   :  { %803 = vrot.lane.b32.xlu1 %v801_v42, %s2983_s27 }
 0x16f   :  { %v823_v44 = vpop.permute.xlu0 %822 }
 0x170   :  { %v825_v45 = vmul.f32 %v2863_v43, %v823_v44 }
 0x172   :  { %827 = vrot.lane.b32.xlu1 %v825_v45, %s2983_s27 }
 0x1e0   :  { %v804_v47 = vpop.permute.xlu1 %803 }
 0x1e1   :  { %v3137_v48 = vadd.f32 %v804_v47, %v796_v46 }
 0x1e3   :  { %2864 = vtanh.f32 %v3137_v48 }
 0x1e4   :  { %v828_v50 = vpop.permute.xlu1 %827 }
 0x1e5   :  { %v3140_v51 = vadd.f32 %v828_v50, %v820_v49 }
 0x1e7   :  { %2866 = vtanh.f32 %v3140_v51 }
 0x1ed   :  { %v2865_v57 = vpop.eup %2864 }
 0x1ee   :  { %809 = vrot.lane.b32.xlu0 %v2865_v57, %s2983_s27 }
 0x1f1   :  { %v2867_v60 = vpop.eup %2866 }
 0x1f2   :  { %833 = vrot.lane.b32.xlu1 %v2867_v60, %s2983_s27 }
 0x260   :  { %v810_v62 = vpop.permute.xlu0 %809 }
 0x261   :  { %v812_v63 = vmul.f32 %v2861_v40, %v810_v62 }
 0x263   :  { %838 = vrot.lane.b32.xlu0 %v812_v63, %s2984_s0  ;;  %v286_v63 = vadd.f32 %v3114_v19, %v3129_v25 }
 0x264   :  { %v834_v0 = vpop.permute.xlu1 %833 }
 0x265   :  { %v836_v1 = vmul.f32 %v2863_v43, %v834_v0 }
 0x267   :  { %914 = vrot.lane.b32.xlu1 %v836_v1, %s2984_s0 }
 0x2d5   :  { %v839_v10 = vpop.permute.xlu0 %838 }
 0x2d6   :  { %2593 = vmatmul.mubr.msk.f32.vlgmr.msra.gmra.mrb[8].mxu1 %vm713_vm3, %v839_v10 }
 0x2d7   :  { %2769 = vmatpush3.bf16.msra.mxu1 %v3089_v11  ;;  %2614 = vmatprep.mubr.msk.f32.mxu1 %vm2981_vm2, %v2982_v16 }
 0x2d8   :  { %2770 = vmatprep.subr.bf16.mxu1 %v2980_v12 }
 0x2d9   :  { %v915_v13 = vpop.permute.xlu1 %914 }
 0x2da   :  { %2604 = vmatmul.mubr.msk.f32.vlgmr.msra.gmra.mrb[10].mxu0 %vm713_vm3, %v915_v13 }
 0x2db   :  { %2772 = vmatpush3.bf16.msra.mxu1 %v3100_v15  ;;  %2775 = vmatpush3.bf16.msra.mxu0 %v3089_v11 }
 0x2dc   :  { %2776 = vmatprep.subr.bf16.mxu0 %v2980_v12  ;;  %2625 = vmatprep.mubr.msk.f32.mxu0 %vm2981_vm2, %v2982_v16 }
 0x2dd   :  { %2779 = vmatprep.subr.bf16.mxu1 %v2980_v12 }
 0x2df   :  { %2778 = vmatpush3.bf16.msra.mxu0 %v3100_v15 }
 0x2e0   :  { %2785 = vmatprep.subr.bf16.mxu0 %v2980_v12 }
 0x3a9   :  { %v908_v17 = vpop.f32.mrb[8].mxu1 }
 0x3aa   :  { %v912_v18 = vadd.f32 %v908_v17, %v197_v14  ;;  %v2594_v26 = vpop.f32.mrb[9].mxu1 }
 0x3ac   :  { %2868 = vtanh.f32 %v912_v18  ;;  %v2399_v33 = vmul.f32 -1.442695, %v912_v18 }
 0x3ad   :  { %v984_v28 = vpop.f32.mrb[10].mxu0 }
 0x3ae   :  { %v988_v29 = vadd.f32 %v984_v28, %v202_v27  ;;  %v2605_v30 = vpop.f32.mrb[11].mxu0 }
 0x3b0   :  { %2870 = vtanh.f32 %v988_v29  ;;  %v2400_v34 = vmul.f32 -1.442695, %v988_v29 }
 0x3b1   :  { %2872 = vpow2.f32 %v2399_v33 }
 0x3b2   :  { %2874 = vpow2.f32 %v2400_v34 }
 0x3b6   :  { %v2869_v31 = vpop.eup %2868 }
 0x3b7   :  { %998 = vrot.lane.b32.xlu0 %v2869_v31, %s2983_s27 }
 0x3ba   :  { %v2871_v32 = vpop.eup %2870 }
 0x3bb   :  { %1022 = vrot.lane.b32.xlu1 %v2871_v32, %s2983_s27  ;;  %v2873_v35 = vpop.eup %2872 }
 0x3bc   :  { %v992_v36 = vadd.f32 1.0, %v2873_v35  ;;  %v2875_v37 = vpop.eup %2874 }
 0x3bd   :  { %v1016_v38 = vadd.f32 1.0, %v2875_v37 }
 0x3be   :  { %2876 = vrcp.f32 %v992_v36 }
 0x3bf   :  { %2878 = vrcp.f32 %v1016_v38 }
 0x3c8   :  { %v2877_v39 = vpop.eup %2876 }
 0x3c9   :  { %v2879_v42 = vpop.eup %2878  ;;  %v996_v45 = vmul.f32 %v2877_v39, %v3137_v48 }
 0x3ca   :  { %v1020_v49 = vmul.f32 %v2879_v42, %v3140_v51 }
 0x429   :  { %v999_v40 = vpop.permute.xlu0 %998 }
 0x42a   :  { %v1001_v41 = vmul.f32 %v2877_v39, %v999_v40 }
 0x42c   :  { %1003 = vrot.lane.b32.xlu0 %v1001_v41, %s2983_s27 }
 0x42d   :  { %v1023_v43 = vpop.permute.xlu1 %1022 }
 0x42e   :  { %v1025_v44 = vmul.f32 %v2879_v42, %v1023_v43 }
 0x430   :  { %1027 = vrot.lane.b32.xlu1 %v1025_v44, %s2983_s27 }
 0x49e   :  { %v1004_v46 = vpop.permute.xlu0 %1003 }
 0x49f   :  { %v1006_v47 = vadd.f32 %v1004_v46, %v996_v45  ;;  %v365_v46 = vadd.f32 %v3129_v25, %v3198_v5 }
 0x4a1   :  { %2880 = vtanh.f32 %v1006_v47 }
 0x4a2   :  { %v1028_v50 = vpop.permute.xlu1 %1027 }
 0x4a3   :  { %v1030_v52 = vadd.f32 %v1028_v50, %v1020_v49 }
 0x4a5   :  { %2882 = vtanh.f32 %v1030_v52 }
 0x4ab   :  { %v2881_v53 = vpop.eup %2880 }
 0x4ac   :  { %1009 = vrot.lane.b32.xlu0 %v2881_v53, %s2983_s27 }
 0x4af   :  { %v2883_v54 = vpop.eup %2882 }
 0x4b0   :  { %1033 = vrot.lane.b32.xlu1 %v2883_v54, %s2983_s27 }
 0x51e   :  { %v1010_v55 = vpop.permute.xlu0 %1009 }
 0x51f   :  { %v1012_v56 = vmul.f32 %v2877_v39, %v1010_v55 }
 0x521   :  { %1038 = vrot.lane.b32.xlu0 %v1012_v56, %s2984_s0 }
 0x522   :  { %v1034_v57 = vpop.permute.xlu1 %1033 }
 0x523   :  { %v1036_v48 = vmul.f32 %v2879_v42, %v1034_v57 }
 0x525   :  { %1114 = vrot.lane.b32.xlu1 %v1036_v48, %s2984_s0 }
 0x593   :  { %v1039_v58 = vpop.permute.xlu0 %1038 }
 0x594   :  { %2615 = vmatmul.mubr.msk.f32.vlgmr.msra.gmra.mrb[10].mxu1 %vm713_vm3, %v1039_v58 }
 0x595   :  { %2781 = vmatpush3.bf16.msra.mxu1 %v3089_v11  ;;  %2636 = vmatprep.mubr.msk.f32.mxu1 %vm2981_vm2, %v2982_v16 }
 0x596   :  { %2782 = vmatprep.subr.bf16.mxu1 %v2980_v12 }
 0x597   :  { %v1115_v51 = vpop.permute.xlu1 %1114 }
 0x598   :  { %2626 = vmatmul.mubr.msk.f32.vlgmr.msra.gmra.mrb[12].mxu0 %vm713_vm3, %v1115_v51 }
 0x599   :  { %2784 = vmatpush3.bf16.msra.mxu1 %v3100_v15  ;;  %2787 = vmatpush3.bf16.msra.mxu0 %v3089_v11 }
 0x59a   :  { %2788 = vmatprep.subr.bf16.mxu0 %v2980_v12  ;;  %2647 = vmatprep.mubr.msk.f32.mxu0 %vm2981_vm2, %v2982_v16 }
 0x59b   :  { %2791 = vmatprep.subr.bf16.mxu1 %v2980_v12 }
 0x59d   :  { %2790 = vmatpush3.bf16.msra.mxu0 %v3100_v15 }
 0x59e   :  { %2797 = vmatprep.subr.bf16.mxu0 %v2980_v12 }
 0x667   :  { %v1108_v60 = vpop.f32.mrb[10].mxu1 }
 0x668   :  { %v1112_v61 = vadd.f32 %v1108_v60, %v281_v59  ;;  %v2616_v62 = vpop.f32.mrb[11].mxu1 }
 0x66a   :  { %2884 = vtanh.f32 %v1112_v61  ;;  %v2403_v13 = vmul.f32 -1.442695, %v1112_v61 }
 0x66b   :  { %v1184_v0 = vpop.f32.mrb[12].mxu0 }
 0x66c   :  { %v1188_v1 = vadd.f32 %v1184_v0, %v286_v63  ;;  %v2627_v2 = vpop.f32.mrb[13].mxu0 }
 0x66e   :  { %2886 = vtanh.f32 %v1188_v1  ;;  %v2404_v20 = vmul.f32 -1.442695, %v1188_v1 }
 0x66f   :  { %2888 = vpow2.f32 %v2403_v13 }
 0x670   :  { %2890 = vpow2.f32 %v2404_v20 }
 0x674   :  { %v2885_v3 = vpop.eup %2884 }
 0x675   :  { %1198 = vrot.lane.b32.xlu0 %v2885_v3, %s2983_s27 }
 0x678   :  { %v2887_v10 = vpop.eup %2886 }
 0x679   :  { %1222 = vrot.lane.b32.xlu1 %v2887_v10, %s2983_s27  ;;  %v2889_v14 = vpop.eup %2888 }
 0x67a   :  { %v1192_v17 = vadd.f32 1.0, %v2889_v14  ;;  %v2891_v18 = vpop.eup %2890 }
 0x67b   :  { %v1216_v19 = vadd.f32 1.0, %v2891_v18 }
 0x67c   :  { %2892 = vrcp.f32 %v1192_v17 }
 0x67d   :  { %2894 = vrcp.f32 %v1216_v19 }
 0x686   :  { %v2893_v26 = vpop.eup %2892 }
 0x687   :  { %v2895_v29 = vpop.eup %2894  ;;  %v1196_v32 = vmul.f32 %v2893_v26, %v1006_v47 }
 0x688   :  { %v1220_v35 = vmul.f32 %v2895_v29, %v1030_v52  ;;  %v370_v52 = vadd.f32 %v3196_v4, %v3129_v25 }
 0x6e7   :  { %v1199_v27 = vpop.permute.xlu0 %1198 }
 0x6e8   :  { %v1201_v28 = vmul.f32 %v2893_v26, %v1199_v27 }
 0x6ea   :  { %1203 = vrot.lane.b32.xlu0 %v1201_v28, %s2983_s27 }
 0x6eb   :  { %v1223_v30 = vpop.permute.xlu1 %1222 }
 0x6ec   :  { %v1225_v31 = vmul.f32 %v2895_v29, %v1223_v30 }
 0x6ee   :  { %1227 = vrot.lane.b32.xlu1 %v1225_v31, %s2983_s27  ;;  %v449_v31 = vadd.f32 %v3129_v25, %v3120_v22 }
 0x75c   :  { %v1204_v33 = vpop.permute.xlu0 %1203 }
 0x75d   :  { %v1206_v34 = vadd.f32 %v1204_v33, %v1196_v32 }
 0x75f   :  { %2896 = vtanh.f32 %v1206_v34 }
 0x760   :  { %v1228_v36 = vpop.permute.xlu1 %1227 }
 0x761   :  { %v1230_v37 = vadd.f32 %v1228_v36, %v1220_v35  ;;  %v454_v35 = vadd.f32 %v3118_v21, %v3129_v25 }
 0x763   :  { %2898 = vtanh.f32 %v1230_v37 }
 0x769   :  { %v2897_v38 = vpop.eup %2896 }
 0x76a   :  { %1209 = vrot.lane.b32.xlu0 %v2897_v38, %s2983_s27 }
 0x76d   :  { %v2899_v39 = vpop.eup %2898 }
 0x76e   :  { %1233 = vrot.lane.b32.xlu1 %v2899_v39, %s2983_s27 }
 0x7dc   :  { %v1210_v40 = vpop.permute.xlu0 %1209 }
 0x7dd   :  { %v1212_v41 = vmul.f32 %v2893_v26, %v1210_v40 }
 0x7df   :  { %1238 = vrot.lane.b32.xlu0 %v1212_v41, %s2984_s0 }
 0x7e0   :  { %v1234_v42 = vpop.permute.xlu1 %1233 }
 0x7e1   :  { %v1236_v43 = vmul.f32 %v2895_v29, %v1234_v42 }
 0x7e3   :  { %1314 = vrot.lane.b32.xlu1 %v1236_v43, %s2984_s0 }
 0x851   :  { %v1239_v44 = vpop.permute.xlu0 %1238 }
 0x852   :  { %2637 = vmatmul.mubr.msk.f32.vlgmr.msra.gmra.mrb[12].mxu1 %vm713_vm3, %v1239_v44 }
 0x853   :  { %2793 = vmatpush3.bf16.msra.mxu1 %v3089_v11  ;;  %2658 = vmatprep.mubr.msk.f32.mxu1 %vm2981_vm2, %v2982_v16 }
 0x854   :  { %2794 = vmatprep.subr.bf16.mxu1 %v2980_v12 }
 0x855   :  { %v1315_v45 = vpop.permute.xlu1 %1314 }
 0x856   :  { %2648 = vmatmul.mubr.msk.f32.vlgmr.msra.gmra.mrb[14].mxu0 %vm713_vm3, %v1315_v45 }
 0x857   :  { %2796 = vmatpush3.bf16.msra.mxu1 %v3100_v15  ;;  %2799 = vmatpush3.bf16.msra.mxu0 %v3089_v11 }
 0x858   :  { %2800 = vmatprep.subr.bf16.mxu0 %v2980_v12  ;;  %2669 = vmatprep.mubr.msk.f32.mxu0 %vm2981_vm2, %v2982_v16 }
 0x859   :  { %2803 = vmatprep.subr.bf16.mxu1 %v2980_v12 }
 0x85b   :  { %2802 = vmatpush3.bf16.msra.mxu0 %v3100_v15 }
 0x85c   :  { %2809 = vmatprep.subr.bf16.mxu0 %v2980_v12 }
 0x925   :  { %v1308_v47 = vpop.f32.mrb[12].mxu1 }
 0x926   :  { %v1312_v49 = vadd.f32 %v1308_v47, %v365_v46  ;;  %v2638_v50 = vpop.f32.mrb[13].mxu1 }
 0x928   :  { %2900 = vtanh.f32 %v1312_v49  ;;  %v2407_v48 = vmul.f32 -1.442695, %v1312_v49 }
 0x929   :  { %v1384_v53 = vpop.f32.mrb[14].mxu0 }
 0x92a   :  { %v1388_v54 = vadd.f32 %v1384_v53, %v370_v52  ;;  %v2649_v55 = vpop.f32.mrb[15].mxu0 }
 0x92c   :  { %2902 = vtanh.f32 %v1388_v54  ;;  %v2408_v5 = vmul.f32 -1.442695, %v1388_v54 }
 0x92d   :  { %2904 = vpow2.f32 %v2407_v48 }
 0x92e   :  { %2906 = vpow2.f32 %v2408_v5 }
 0x932   :  { %v2901_v56 = vpop.eup %2900 }
 0x933   :  { %1398 = vrot.lane.b32.xlu0 %v2901_v56, %s2983_s27 }
 0x936   :  { %v2903_v57 = vpop.eup %2902 }
 0x937   :  { %1422 = vrot.lane.b32.xlu1 %v2903_v57, %s2983_s27  ;;  %v2905_v58 = vpop.eup %2904 }
 0x938   :  { %v1392_v51 = vadd.f32 1.0, %v2905_v58  ;;  %v2907_v59 = vpop.eup %2906 }
 0x939   :  { %v1416_v4 = vadd.f32 1.0, %v2907_v59 }
 0x93a   :  { %2908 = vrcp.f32 %v1392_v51 }
 0x93b   :  { %2910 = vrcp.f32 %v1416_v4 }
 0x944   :  { %v2909_v60 = vpop.eup %2908 }
 0x945   :  { %v2911_v63 = vpop.eup %2910  ;;  %v1396_v2 = vmul.f32 %v2909_v60, %v1206_v34 }
 0x946   :  { %v1420_v13 = vmul.f32 %v2911_v63, %v1230_v37 }
 0x9a5   :  { %v1399_v61 = vpop.permute.xlu0 %1398 }
 0x9a6   :  { %v1401_v62 = vmul.f32 %v2909_v60, %v1399_v61 }
 0x9a8   :  { %1403 = vrot.lane.b32.xlu0 %v1401_v62, %s2983_s27 }
 0x9a9   :  { %v1423_v0 = vpop.permute.xlu1 %1422 }
 0x9aa   :  { %v1425_v1 = vmul.f32 %v2911_v63, %v1423_v0 }
 0x9ac   :  { %1427 = vrot.lane.b32.xlu1 %v1425_v1, %s2983_s27 }
 0xa1a   :  { %v1404_v3 = vpop.permute.xlu0 %1403 }
 0xa1b   :  { %v1406_v10 = vadd.f32 %v1404_v3, %v1396_v2  ;;  %v538_v3 = vadd.f32 %v3200_v6, %v3129_v25 }
 0xa1d   :  { %2912 = vtanh.f32 %v1406_v10 }
 0xa1e   :  { %v1428_v20 = vpop.permute.xlu1 %1427 }
 0xa1f   :  { %v1430_v14 = vadd.f32 %v1428_v20, %v1420_v13 }
 0xa21   :  { %2914 = vtanh.f32 %v1430_v14 }
 0xa27   :  { %v2913_v17 = vpop.eup %2912 }
 0xa28   :  { %1409 = vrot.lane.b32.xlu0 %v2913_v17, %s2983_s27 }
 0xa2b   :  { %v2915_v18 = vpop.eup %2914 }
 0xa2c   :  { %1433 = vrot.lane.b32.xlu1 %v2915_v18, %s2983_s27 }
 0xa9a   :  { %v1410_v19 = vpop.permute.xlu0 %1409 }
 0xa9b   :  { %v1412_v26 = vmul.f32 %v2909_v60, %v1410_v19 }
 0xa9d   :  { %1438 = vrot.lane.b32.xlu0 %v1412_v26, %s2984_s0 }
 0xa9e   :  { %v1434_v27 = vpop.permute.xlu1 %1433 }
 0xa9f   :  { %v1436_v28 = vmul.f32 %v2911_v63, %v1434_v27  ;;  %v533_v63 = vadd.f32 %v3129_v25, %v3202_v7 }
 0xaa1   :  { %1514 = vrot.lane.b32.xlu1 %v1436_v28, %s2984_s0 }
 0xb0f   :  { %v1439_v29 = vpop.permute.xlu0 %1438 }
 0xb10   :  { %2659 = vmatmul.mubr.msk.f32.vlgmr.msra.gmra.mrb[14].mxu1 %vm713_vm3, %v1439_v29 }
 0xb11   :  { %2805 = vmatpush3.bf16.msra.mxu1 %v3089_v11  ;;  %2680 = vmatprep.mubr.msk.f32.mxu1 %vm2981_vm2, %v2982_v16 }
 0xb12   :  { %2806 = vmatprep.subr.bf16.mxu1 %v2980_v12 }
 0xb13   :  { %v1515_v30 = vpop.permute.xlu1 %1514 }
 0xb14   :  { %2670 = vmatmul.mubr.msk.f32.vlgmr.msra.gmra.mrb[16].mxu0 %vm713_vm3, %v1515_v30 }
 0xb15   :  { %2808 = vmatpush3.bf16.msra.mxu1 %v3100_v15  ;;  %2811 = vmatpush3.bf16.msra.mxu0 %v3089_v11 }
 0xb16   :  { %2812 = vmatprep.subr.bf16.mxu0 %v2980_v12  ;;  %2691 = vmatprep.mubr.msk.f32.mxu0 %vm2981_vm2, %v2982_v16 }
 0xb17   :  { %2815 = vmatprep.subr.bf16.mxu1 %v2980_v12 }
 0xb19   :  { %2814 = vmatpush3.bf16.msra.mxu0 %v3100_v15 }
 0xb1a   :  { %2821 = vmatprep.subr.bf16.mxu0 %v2980_v12 }
 0xbe3   :  { %v1508_v32 = vpop.f32.mrb[14].mxu1 }
 0xbe4   :  { %v1512_v33 = vadd.f32 %v1508_v32, %v449_v31  ;;  %v2660_v34 = vpop.f32.mrb[15].mxu1 }
 0xbe6   :  { %2916 = vtanh.f32 %v1512_v33  ;;  %v2411_v41 = vmul.f32 -1.442695, %v1512_v33 }
 0xbe7   :  { %v1584_v36 = vpop.f32.mrb[16].mxu0 }
 0xbe8   :  { %v1588_v37 = vadd.f32 %v1584_v36, %v454_v35  ;;  %v2671_v38 = vpop.f32.mrb[17].mxu0 }
 0xbea   :  { %2918 = vtanh.f32 %v1588_v37  ;;  %v2412_v22 = vmul.f32 -1.442695, %v1588_v37 }
 0xbeb   :  { %2920 = vpow2.f32 %v2411_v41 }
 0xbec   :  { %2922 = vpow2.f32 %v2412_v22 }
 0xbf0   :  { %v2917_v39 = vpop.eup %2916 }
 0xbf1   :  { %1598 = vrot.lane.b32.xlu0 %v2917_v39, %s2983_s27 }
 0xbf4   :  { %v2919_v40 = vpop.eup %2918 }
 0xbf5   :  { %1622 = vrot.lane.b32.xlu1 %v2919_v40, %s2983_s27  ;;  %v2921_v42 = vpop.eup %2920 }
 0xbf6   :  { %v1592_v43 = vadd.f32 1.0, %v2921_v42  ;;  %v2923_v44 = vpop.eup %2922 }
 0xbf7   :  { %v1616_v21 = vadd.f32 1.0, %v2923_v44 }
 0xbf8   :  { %2924 = vrcp.f32 %v1592_v43 }
 0xbf9   :  { %2926 = vrcp.f32 %v1616_v21 }
 0xc02   :  { %v2925_v45 = vpop.eup %2924 }
 0xc03   :  { %v2927_v49 = vpop.eup %2926  ;;  %v1596_v53 = vmul.f32 %v2925_v45, %v1406_v10 }
 0xc04   :  { %v1620_v56 = vmul.f32 %v2927_v49, %v1430_v14 }
 0xc63   :  { %v1599_v46 = vpop.permute.xlu0 %1598 }
 0xc64   :  { %v1601_v47 = vmul.f32 %v2925_v45, %v1599_v46  ;;  %v617_v46 = vadd.f32 %v3129_v25, %v3124_v24 }
 0xc66   :  { %1603 = vrot.lane.b32.xlu0 %v1601_v47, %s2983_s27 }
 0xc67   :  { %v1623_v50 = vpop.permute.xlu1 %1622 }
 0xc68   :  { %v1625_v52 = vmul.f32 %v2927_v49, %v1623_v50 }
 0xc6a   :  { %1627 = vrot.lane.b32.xlu1 %v1625_v52, %s2983_s27  ;;  %v622_v52 = vadd.f32 %v3122_v23, %v3129_v25 }
 0xcd8   :  { %v1604_v54 = vpop.permute.xlu0 %1603 }
 0xcd9   :  { %v1606_v55 = vadd.f32 %v1604_v54, %v1596_v53 }
 0xcdb   :  { %2928 = vtanh.f32 %v1606_v55 }
 0xcdc   :  { %v1628_v57 = vpop.permute.xlu1 %1627 }
 0xcdd   :  { %v1630_v48 = vadd.f32 %v1628_v57, %v1620_v56 }
 0xcdf   :  { %2930 = vtanh.f32 %v1630_v48 }
 0xce5   :  { %v2929_v5 = vpop.eup %2928 }
 0xce6   :  { %1609 = vrot.lane.b32.xlu0 %v2929_v5, %s2983_s27 }
 0xce9   :  { %v2931_v58 = vpop.eup %2930 }
 0xcea   :  { %1633 = vrot.lane.b32.xlu1 %v2931_v58, %s2983_s27 }
 0xd58   :  { %v1610_v51 = vpop.permute.xlu0 %1609 }
 0xd59   :  { %v1612_v59 = vmul.f32 %v2925_v45, %v1610_v51 }
 0xd5b   :  { %1638 = vrot.lane.b32.xlu0 %v1612_v59, %s2984_s0 }
 0xd5c   :  { %v1634_v4 = vpop.permute.xlu1 %1633 }
 0xd5d   :  { %v1636_v60 = vmul.f32 %v2927_v49, %v1634_v4 }
 0xd5f   :  { %1714 = vrot.lane.b32.xlu1 %v1636_v60, %s2984_s0 }
 0xdcd   :  { %v1639_v61 = vpop.permute.xlu0 %1638 }
 0xdce   :  { %2681 = vmatmul.mubr.msk.f32.vlgmr.msra.gmra.mrb[16].mxu1 %vm713_vm3, %v1639_v61 }
 0xdcf   :  { %2817 = vmatpush3.bf16.msra.mxu1 %v3089_v11  ;;  %2702 = vmatprep.mubr.msk.f32.mxu1 %vm2981_vm2, %v2982_v16 }
 0xdd0   :  { %2818 = vmatprep.subr.bf16.mxu1 %v2980_v12 }
 0xdd1   :  { %v1715_v62 = vpop.permute.xlu1 %1714 }
 0xdd2   :  { %2692 = vmatmul.mubr.msk.f32.vlgmr.msra.gmra.mrb[18].mxu0 %vm713_vm3, %v1715_v62 }
 0xdd3   :  { %2820 = vmatpush3.bf16.msra.mxu1 %v3100_v15  ;;  %2823 = vmatpush3.bf16.msra.mxu0 %v3089_v11 }
 0xdd4   :  { %2824 = vmatprep.subr.bf16.mxu0 %v2980_v12  ;;  %2713 = vmatprep.mubr.msk.f32.mxu0 %vm2981_vm2, %v2982_v16 }
 0xdd5   :  { %2827 = vmatprep.subr.bf16.mxu1 %v2980_v12 }
 0xdd7   :  { %2826 = vmatpush3.bf16.msra.mxu0 %v3100_v15 }
 0xdd8   :  { %2833 = vmatprep.subr.bf16.mxu0 %v2980_v12 }
 0xea1   :  { %v1708_v0 = vpop.f32.mrb[16].mxu1 }
 0xea2   :  { %v1712_v1 = vadd.f32 %v1708_v0, %v533_v63  ;;  %v2682_v2 = vpop.f32.mrb[17].mxu1 }
 0xea4   :  { %2932 = vtanh.f32 %v1712_v1  ;;  %v2415_v18 = vmul.f32 -1.442695, %v1712_v1 }
 0xea5   :  { %v1784_v10 = vpop.f32.mrb[18].mxu0 }
 0xea6   :  { %v1788_v13 = vadd.f32 %v1784_v10, %v538_v3  ;;  %v2693_v20 = vpop.f32.mrb[19].mxu0 }
 0xea8   :  { %2934 = vtanh.f32 %v1788_v13  ;;  %v2416_v7 = vmul.f32 -1.442695, %v1788_v13 }
 0xea9   :  { %2936 = vpow2.f32 %v2415_v18 }
 0xeaa   :  { %2938 = vpow2.f32 %v2416_v7  ;;  %v701_v7 = vadd.f32 %v3129_v25, %v3206_v9 }
 0xeae   :  { %v2933_v14 = vpop.eup %2932 }
 0xeaf   :  { %1798 = vrot.lane.b32.xlu0 %v2933_v14, %s2983_s27 }
 0xeb2   :  { %v2935_v17 = vpop.eup %2934 }
 0xeb3   :  { %1822 = vrot.lane.b32.xlu1 %v2935_v17, %s2983_s27  ;;  %v2937_v19 = vpop.eup %2936 }
 0xeb4   :  { %v1792_v26 = vadd.f32 1.0, %v2937_v19  ;;  %v2939_v27 = vpop.eup %2938 }
 0xeb5   :  { %v1816_v6 = vadd.f32 1.0, %v2939_v27 }
 0xeb6   :  { %2940 = vrcp.f32 %v1792_v26 }
 0xeb7   :  { %2942 = vrcp.f32 %v1816_v6  ;;  %v706_v6 = vadd.f32 %v3204_v8, %v3129_v25 }
 0xec0   :  { %v2941_v28 = vpop.eup %2940 }
 0xec1   :  { %v2943_v31 = vpop.eup %2942  ;;  %v1796_v34 = vmul.f32 %v2941_v28, %v1606_v55 }
 0xec2   :  { %v1820_v37 = vmul.f32 %v2943_v31, %v1630_v48 }
 0xf21   :  { %v1799_v29 = vpop.permute.xlu0 %1798 }
 0xf22   :  { %v1801_v30 = vmul.f32 %v2941_v28, %v1799_v29 }
 0xf24   :  { %1803 = vrot.lane.b32.xlu0 %v1801_v30, %s2983_s27 }
 0xf25   :  { %v1823_v32 = vpop.permute.xlu1 %1822 }
 0xf26   :  { %v1825_v33 = vmul.f32 %v2943_v31, %v1823_v32 }
 0xf28   :  { %1827 = vrot.lane.b32.xlu1 %v1825_v33, %s2983_s27 }
 0xf96   :  { %v1804_v35 = vpop.permute.xlu0 %1803 }
 0xf97   :  { %v1806_v36 = vadd.f32 %v1804_v35, %v1796_v34 }
 0xf99   :  { %2944 = vtanh.f32 %v1806_v36 }
 0xf9a   :  { %v1828_v38 = vpop.permute.xlu1 %1827 }
 0xf9b   :  { %v1830_v39 = vadd.f32 %v1828_v38, %v1820_v37 }
 0xf9d   :  { %2946 = vtanh.f32 %v1830_v39 }
 0xfa3   :  { %v2945_v40 = vpop.eup %2944 }
 0xfa4   :  { %1809 = vrot.lane.b32.xlu0 %v2945_v40, %s2983_s27 }
 0xfa7   :  { %v2947_v41 = vpop.eup %2946 }
 0xfa8   :  { %1833 = vrot.lane.b32.xlu1 %v2947_v41, %s2983_s27 }
0x1016   :  { %v1810_v22 = vpop.permute.xlu0 %1809 }
0x1017   :  { %v1812_v42 = vmul.f32 %v2941_v28, %v1810_v22 }
0x1019   :  { %1838 = vrot.lane.b32.xlu0 %v1812_v42, %s2984_s0 }
0x101a   :  { %v1834_v43 = vpop.permute.xlu1 %1833 }
0x101b   :  { %v1836_v44 = vmul.f32 %v2943_v31, %v1834_v43 }
0x101d   :  { %1914 = vrot.lane.b32.xlu1 %v1836_v44, %s2984_s0 }
0x108b   :  { %v1839_v21 = vpop.permute.xlu0 %1838 }
0x108c   :  { %2703 = vmatmul.mubr.msk.f32.vlgmr.msra.gmra.mrb[18].mxu1 %vm713_vm3, %v1839_v21 }
0x108d   :  { %2829 = vmatpush3.bf16.msra.mxu1 %v3089_v11  ;;  %2724 = vmatprep.mubr.msk.f32.mxu1 %vm2981_vm2, %v2982_v16 }
0x108e   :  { %2830 = vmatprep.subr.bf16.mxu1 %v2980_v12 }
0x108f   :  { %v1915_v45 = vpop.permute.xlu1 %1914 }
0x1090   :  { %2714 = vmatmul.mubr.msk.f32.vlgmr.msra.gmra.mrb[20].mxu0 %vm713_vm3, %v1915_v45 }
0x1091   :  { %2832 = vmatpush3.bf16.msra.mxu1 %v3100_v15  ;;  %2835 = vmatpush3.bf16.msra.mxu0 %v3089_v11 }
0x1092   :  { %2836 = vmatprep.subr.bf16.mxu0 %v2980_v12  ;;  %2735 = vmatprep.mubr.msk.f32.mxu0 %vm2981_vm2, %v2982_v16 }
0x1095   :  { %2838 = vmatpush3.bf16.msra.mxu0 %v3100_v15 }
0x115f   :  { %v1908_v47 = vpop.f32.mrb[18].mxu1 }
0x1160   :  { %v1912_v49 = vadd.f32 %v1908_v47, %v617_v46  ;;  %v2704_v50 = vpop.f32.mrb[19].mxu1  ;;  %v2249_v47 = vld [vmem:[%s3413_s4] sm:$0xff] }
0x1162   :  { %2948 = vtanh.f32 %v1912_v49  ;;  %v2419_v15 = vmul.f32 -1.442695, %v1912_v49  ;;  %v2250_v49 = vld [vmem:[%s3413_s4 + $0x8] sm:$0xff] }
0x1163   :  { %v1984_v53 = vpop.f32.mrb[20].mxu0  ;;  %v2839_v50 = vpack.c.bf16 %v2250_v49, %v2249_v47 }
0x1164   :  { %v1988_v54 = vadd.f32 %v1984_v53, %v622_v52  ;;  %v2715_v11 = vpop.f32.mrb[21].mxu0  ;;  %v2251_v53 = vld [vmem:[%s3413_s4 + $0x10] sm:$0xff] }
0x1165   :  { %2840 = vmatprep.subr.bf16.mxu1 %v2839_v50 }
0x1166   :  { %2950 = vtanh.f32 %v1988_v54  ;;  %v2420_v24 = vmul.f32 -1.442695, %v1988_v54  ;;  %v2252_v54 = vld [vmem:[%s3413_s4 + $0x18] sm:$0xff] }
0x1167   :  { %2952 = vpow2.f32 %v2419_v15  ;;  %v2843_v11 = vpack.c.bf16 %v2252_v54, %v2251_v53 }
0x1168   :  { %2954 = vpow2.f32 %v2420_v24 }
0x116c   :  { %v2949_v12 = vpop.eup %2948 }
0x116d   :  { %1998 = vrot.lane.b32.xlu0 %v2949_v12, %s2983_s27 }
0x1170   :  { %v2951_v16 = vpop.eup %2950 }
0x1171   :  { %2022 = vrot.lane.b32.xlu1 %v2951_v16, %s2983_s27  ;;  %v2953_v55 = vpop.eup %2952 }
0x1172   :  { %v1992_v56 = vadd.f32 1.0, %v2953_v55  ;;  %v2955_v57 = vpop.eup %2954 }
0x1173   :  { %v2016_v23 = vadd.f32 1.0, %v2955_v57 }
0x1174   :  { %2956 = vrcp.f32 %v1992_v56 }
0x1175   :  { %2958 = vrcp.f32 %v2016_v23 }
0x117e   :  { %v2957_v48 = vpop.eup %2956 }
0x117f   :  { %v2959_v51 = vpop.eup %2958  ;;  %v1996_v60 = vmul.f32 %v2957_v48, %v1806_v36 }
0x1180   :  { %v2020_v63 = vmul.f32 %v2959_v51, %v1830_v39 }
0x11df   :  { %v1999_v5 = vpop.permute.xlu0 %1998 }
0x11e0   :  { %v2001_v58 = vmul.f32 %v2957_v48, %v1999_v5 }
0x11e2   :  { %2003 = vrot.lane.b32.xlu0 %v2001_v58, %s2983_s27  ;;  %v2425_v58 = vld [vmem:[%s3415_s5] ss:$0 sm:$0xff] }
0x11e3   :  { %v2023_v59 = vpop.permute.xlu1 %2022 }
0x11e4   :  { %v2025_v4 = vmul.f32 %v2959_v51, %v2023_v59 }
0x11e6   :  { %2027 = vrot.lane.b32.xlu1 %v2025_v4, %s2983_s27 }
0x1254   :  { %v2004_v61 = vpop.permute.xlu0 %2003 }
0x1255   :  { %v2006_v62 = vadd.f32 %v2004_v61, %v1996_v60 }
0x1257   :  { %2960 = vtanh.f32 %v2006_v62 }
0x1258   :  { %v2028_v0 = vpop.permute.xlu1 %2027 }
0x1259   :  { %v2030_v1 = vadd.f32 %v2028_v0, %v2020_v63 }
0x125b   :  { %2962 = vtanh.f32 %v2030_v1 }
0x1261   :  { %v2961_v2 = vpop.eup %2960 }
0x1262   :  { %2009 = vrot.lane.b32.xlu0 %v2961_v2, %s2983_s27 }
0x1265   :  { %v2963_v3 = vpop.eup %2962 }
0x1266   :  { %2033 = vrot.lane.b32.xlu1 %v2963_v3, %s2983_s27 }
0x12d4   :  { %v2010_v10 = vpop.permute.xlu0 %2009 }
0x12d5   :  { %v2012_v13 = vmul.f32 %v2957_v48, %v2010_v10 }
0x12d7   :  { %2038 = vrot.lane.b32.xlu0 %v2012_v13, %s2984_s0 }
0x12d8   :  { %v2034_v20 = vpop.permute.xlu1 %2033 }
0x12d9   :  { %v2036_v14 = vmul.f32 %v2959_v51, %v2034_v20 }
0x12db   :  { %2114 = vrot.lane.b32.xlu1 %v2036_v14, %s2984_s0 }
0x1349   :  { %v2039_v17 = vpop.permute.xlu0 %2038 }
0x134a   :  { %2725 = vmatmul.mubr.msk.f32.vlgmr.msra.gmra.mrb[20].mxu1 %vm713_vm3, %v2039_v17 }
0x134b   :  { %2842 = vmatpush3.bf16.msra.mxu1 %v2839_v50 }
0x134c   :  { %2844 = vmatprep.subr.bf16.mxu1 %v2843_v11 }
0x134d   :  { %v2115_v18 = vpop.permute.xlu1 %2114 }
0x134e   :  { %2736 = vmatmul.mubr.msk.f32.vlgmr.msra.gmra.mrb[22].mxu0 %vm713_vm3, %v2115_v18 }
0x134f   :  { %2846 = vmatpush3.bf16.msra.mxu1 %v2843_v11 }
0x141d   :  { %v2108_v19 = vpop.f32.mrb[20].mxu1 }
0x141e   :  { %v2112_v26 = vadd.f32 %v2108_v19, %v701_v7  ;;  %v2726_v27 = vpop.f32.mrb[21].mxu1 }
0x1420   :  { %2964 = vtanh.f32 %v2112_v26  ;;  %v2423_v33 = vmul.f32 -1.442695, %v2112_v26 }
0x1421   :  { %v2184_v28 = vpop.f32.mrb[22].mxu0 }
0x1422   :  { %v2188_v29 = vadd.f32 %v2184_v28, %v706_v6  ;;  %v2737_v30 = vpop.f32.mrb[23].mxu0 }
0x1424   :  { %2966 = vtanh.f32 %v2188_v29  ;;  %v2424_v9 = vmul.f32 -1.442695, %v2188_v29 }
0x1425   :  { %2968 = vpow2.f32 %v2423_v33 }
0x1426   :  { %2970 = vpow2.f32 %v2424_v9 }
0x142a   :  { %v2965_v31 = vpop.eup %2964 }
0x142b   :  { %2198 = vrot.lane.b32.xlu0 %v2965_v31, %s2983_s27 }
0x142e   :  { %v2967_v32 = vpop.eup %2966 }
0x142f   :  { %2222 = vrot.lane.b32.xlu1 %v2967_v32, %s2983_s27  ;;  %v2969_v34 = vpop.eup %2968 }
0x1430   :  { %v2192_v35 = vadd.f32 1.0, %v2969_v34  ;;  %v2971_v36 = vpop.eup %2970 }
0x1431   :  { %v2216_v25 = vadd.f32 1.0, %v2971_v36 }
0x1432   :  { %2972 = vrcp.f32 %v2192_v35 }
0x1433   :  { %2974 = vrcp.f32 %v2216_v25 }
0x143c   :  { %v2973_v8 = vpop.eup %2972 }
0x143d   :  { %v2975_v39 = vpop.eup %2974  ;;  %v2196_v22 = vmul.f32 %v2973_v8, %v2006_v62 }
0x143e   :  { %v2220_v44 = vmul.f32 %v2975_v39, %v2030_v1 }
0x149d   :  { %v2199_v37 = vpop.permute.xlu0 %2198 }
0x149e   :  { %v2201_v38 = vmul.f32 %v2973_v8, %v2199_v37 }
0x14a0   :  { %2203 = vrot.lane.b32.xlu0 %v2201_v38, %s2983_s27 }
0x14a1   :  { %v2223_v40 = vpop.permute.xlu1 %2222 }
0x14a2   :  { %v2225_v41 = vmul.f32 %v2975_v39, %v2223_v40 }
0x14a4   :  { %2227 = vrot.lane.b32.xlu1 %v2225_v41, %s2983_s27 }
0x1512   :  { %v2204_v42 = vpop.permute.xlu0 %2203 }
0x1513   :  { %v2206_v43 = vadd.f32 %v2204_v42, %v2196_v22 }
0x1515   :  { %2976 = vtanh.f32 %v2206_v43 }
0x1516   :  { %v2228_v21 = vpop.permute.xlu1 %2227 }
0x1517   :  { %v2230_v45 = vadd.f32 %v2228_v21, %v2220_v44 }
0x1519   :  { %2978 = vtanh.f32 %v2230_v45 }
0x151f   :  { %v2977_v46 = vpop.eup %2976 }
0x1520   :  { %2209 = vrot.lane.b32.xlu0 %v2977_v46, %s2983_s27 }
0x1523   :  { %v2979_v52 = vpop.eup %2978 }
0x1524   :  { %2233 = vrot.lane.b32.xlu1 %v2979_v52, %s2983_s27 }
0x1592   :  { %v2210_v12 = vpop.permute.xlu0 %2209 }
0x1593   :  { %v2212_v16 = vmul.f32 %v2973_v8, %v2210_v12 }
0x1595   :  { %v2247_v15 = vmax.f32 %v2212_v16, 0.0 }
0x1596   :  { %v2234_v24 = vpop.permute.xlu1 %2233 }
0x1597   :  { %v2236_v55 = vmul.f32 %v2975_v39, %v2234_v24  ;;  %2262 = vrot.lane.b32.xlu0 %v2247_v15, %s2984_s0 }
0x1599   :  { %v2248_v56 = vmax.f32 %v2236_v55, 0.0 }
0x159b   :  { %2264 = vrot.lane.b32.xlu1 %v2248_v56, %s2984_s0  ;;  %2239 = vrot.lane.b32.xlu0 %v2212_v16, %s2984_s0 }
0x159f   :  { %2241 = vrot.lane.b32.xlu1 %v2236_v55, %s2984_s0 }
0x1609   :  { %v2263_v57 = vpop.permute.xlu0 %2262 }
0x160a   :  { %2746 = vmatprep.mubr.msk.f32.mxu1 %vm713_vm3, %v2263_v57 }
0x160d   :  { %v2265_v23 = vpop.permute.xlu1 %2264  ;;  %v2240_v48 = vpop.permute.xlu0 %2239 }
0x160e   :  { %2245 = vst.msk [vmem:[%s3414_s6] sm:$0xff] %vm713_vm3, %v2240_v48  ;;  %2747 = vmatmul.mubr.msk.f32.vlgmr.msra.gmra.mrb[22].mxu1 %vm713_vm3, %v2265_v23 }
0x1611   :  { %v2242_v5 = vpop.permute.xlu1 %2241 }
0x1612   :  { %2246 = vst.msk [vmem:[%s3414_s6 + $0x8] sm:$0xff] %vm713_vm3, %v2242_v5 }
0x16e1   :  { %v2748_v51 = vpop.f32.mrb[22].mxu1 }
0x16e2   :  { %v2342_v59 = vadd.f32 %v2748_v51, %v2425_v58  ;;  %v2336_v4 = vpop.f32.mrb[23].mxu1 }
0x16e3   :  { %v2337_v60 = vadd.f32 %v2425_v58, %v2336_v4 }
0x16e4   :  { %2347 = vst.msk [vmem:[%s3416_s7 + $0x8] sm:$0xff] %vm2345_vm4, %v2342_v59 }
0x16e5   :  { %2346 = vst.msk [vmem:[%s3416_s7] sm:$0xff] %vm2345_vm4, %v2337_v60 }

</bundles_post_ra>
